<compile_context>
chip_gen: v7x
topology: tpu7x:2x2x1
jax: 0.10.0
libtpu: 0.0.40
codegen_flags: <defaults>
</compile_context>

<pallas_src>
import functools

import jax
import jax.numpy as jnp
from jax.experimental import pallas as pl
from jax.experimental.pallas import tpu as pltpu


def lstm_cls_kernel(x_ref, wih_ref, whh_ref, b_ref, wcls_ref, bcls_ref, out_ref,
                    *, seq_len, batch, hidden):
    """Whole LSTM forward + classifier head in one kernel invocation.

    x_ref:    (T*Bp, I)   bf16  time-major, batch-padded inputs (row blocks of Bp per step)
    wih_ref:  (I, 4H)     bf16  W_ih^T
    whh_ref:  (H, 4H)     f32   W_hh^T   (f32 on the recurrent path for parity)
    b_ref:    (1, 4H)     f32   b_ih + b_hh
    wcls_ref: (H, Np)     f32   W_cls^T zero-padded to Np (>=128) lanes
    bcls_ref: (1, Np)     f32   b_cls zero-padded
    out_ref:  (Bp, Np)    f32   logits (lane-dense store)
    """
    H = hidden
    G = 4 * H

    wih = wih_ref[...]
    bias = b_ref[...]

    # --- Chunked input projection (off the serial chain) -------------------------
    # Independent per-chunk matmuls let the scheduler overlap later chunks with the
    # early recurrence steps (a single big matmul would serialize before step 0).
    chunk_T = min(4, seq_len)
    while seq_len % chunk_T:
        chunk_T -= 1
    gx_chunks = []
    for start in range(0, seq_len, chunk_T):
        xc = x_ref[start * batch:(start + chunk_T) * batch, :]
        gx_chunks.append(jnp.dot(xc, wih, preferred_element_type=jnp.float32) + bias)

    whh = whh_ref[...]                                  # (H, 4H) f32, loaded once

    # --- Hoisted constant vregs for the sigmoid/tanh fold ------------------------
    # tanh(x) = 2*sigmoid(2x) - 1  on lanes [2H, 3H); plain sigmoid elsewhere.
    lane = jax.lax.broadcasted_iota(jnp.int32, (batch, G), 1)
    is_cell = jnp.logical_and(lane >= 2 * H, lane < 3 * H)
    neg_pre = jnp.where(is_cell, -2.0, -1.0).astype(jnp.float32)   # exp(-x) / exp(-2x)
    post_scale = jnp.where(is_cell, 2.0, 1.0).astype(jnp.float32)
    post_shift = jnp.where(is_cell, -1.0, 0.0).astype(jnp.float32)

    h = jnp.zeros((batch, H), jnp.float32)
    c = jnp.zeros((batch, H), jnp.float32)

    # --- Fully-unrolled recurrence (T is a small static constant) ----------------
    for t in range(seq_len):
        ci, ri = divmod(t, chunk_T)
        gx = gx_chunks[ci][ri * batch:(ri + 1) * batch, :]          # (Bp, 4H), static slice

        g = gx + jnp.dot(h, whh, preferred_element_type=jnp.float32)  # f32 recurrent matmul

        # Single EUP exp pass + EUP reciprocal; VPU fix-up turns cell lanes into tanh.
        sg = pl.reciprocal(1.0 + jnp.exp(g * neg_pre), approx=True)   # sigmoid(x) / sigmoid(2x)
        gates = sg * post_scale + post_shift                           # i,f,o: sigmoid; g: tanh

        i_g = gates[:, 0 * H:1 * H]
        f_g = gates[:, 1 * H:2 * H]
        g_g = gates[:, 2 * H:3 * H]
        o_g = gates[:, 3 * H:4 * H]

        c = f_g * c + i_g * g_g
        h = o_g * jnp.tanh(c)                                          # 2nd (and last) EUP pass

    # --- Fused classifier head; lane-dense (Bp, Np) store -------------------------
    out_ref[...] = jnp.dot(h, wcls_ref[...],
                           preferred_element_type=jnp.float32) + bcls_ref[...]


def sequence_classifier_forward(x, params, input_size):
    """x: (B, C, H, W) float32. Returns logits (B, n_classes)."""
    B = x.shape[0]
    if x.ndim == 4:
        # torch.transpose(x, 1, 3) on NCHW -> (B, W, H, C)
        x = jnp.transpose(x, (0, 3, 2, 1))
    x = x.reshape(B, -1, input_size)                   # (B, T, I)
    T = x.shape[1]
    I = input_size
    H = params["w_hh"].shape[1]
    n_cls = params["w_cls"].shape[0]

    # Pad batch to a sublane multiple (8) for aligned vregs / MXU rows.
    Bp = max(8, ((B + 7) // 8) * 8)
    x_tm = jnp.transpose(x, (1, 0, 2))                 # time-major (T, B, I)
    if Bp != B:
        x_tm = jnp.pad(x_tm, ((0, 0), (0, Bp - B), (0, 0)))
    x2d = x_tm.reshape(T * Bp, I).astype(jnp.bfloat16)

    # Matmul operands: bf16 only for the one-shot input projection; recurrent path f32.
    w_ih_t = params["w_ih"].T.astype(jnp.bfloat16)     # (I, 4H)
    w_hh_t = params["w_hh"].T.astype(jnp.float32)      # (H, 4H)
    bias = (params["b_ih"] + params["b_hh"])[None, :].astype(jnp.float32)   # (1, 4H)

    # Classifier weights padded to a lane-dense (>=128) output width.
    Np = max(128, ((n_cls + 127) // 128) * 128)
    w_cls_t = jnp.zeros((H, Np), jnp.float32).at[:, :n_cls].set(
        params["w_cls"].T.astype(jnp.float32))
    b_cls = jnp.zeros((1, Np), jnp.float32).at[:, :n_cls].set(
        params["b_cls"][None, :].astype(jnp.float32))

    kernel = functools.partial(lstm_cls_kernel, seq_len=T, batch=Bp, hidden=H)
    logits_pad = pl.pallas_call(
        kernel,
        out_shape=jax.ShapeDtypeStruct((Bp, Np), jnp.float32),
        in_specs=[pl.BlockSpec(memory_space=pltpu.MemorySpace.VMEM)] * 6,
        out_specs=pl.BlockSpec(memory_space=pltpu.MemorySpace.VMEM),
    )(x2d, w_ih_t, w_hh_t, bias, w_cls_t, b_cls)

    return logits_pad[:B, :n_cls]                      # drop batch pad + lane pad


def init_params(key, input_size, hidden_size, n_classes):
    """Deterministic synthetic parameters with PyTorch LSTM shapes (gate order i,f,g,o)."""
    ks = jax.random.split(key, 6)
    s = 0.1
    return {
        "w_ih": s * jax.random.normal(ks[0], (4 * hidden_size, input_size), jnp.float32),
        "w_hh": s * jax.random.normal(ks[1], (4 * hidden_size, hidden_size), jnp.float32),
        "b_ih": s * jax.random.normal(ks[2], (4 * hidden_size,), jnp.float32),
        "b_hh": s * jax.random.normal(ks[3], (4 * hidden_size,), jnp.float32),
        "w_cls": s * jax.random.normal(ks[4], (n_classes, hidden_size), jnp.float32),
        "b_cls": s * jax.random.normal(ks[5], (n_classes,), jnp.float32),
    }


if __name__ == "__main__":
    # x: (B=2, C=4, H=16, W=16) NCHW -> per-batch 1024 elems, input_size=64 -> T=16,
    # hidden_size=32, 2 classes.
    B, C, Hs, Ws = 2, 4, 16, 16
    input_size = 64
    hidden_size = 32
    n_classes = 2

    key = jax.random.PRNGKey(0)
    k_x, k_p = jax.random.split(key)
    x = jax.random.normal(k_x, (B, C, Hs, Ws), jnp.float32)
    params = init_params(k_p, input_size, hidden_size, n_classes)

    fwd = jax.jit(sequence_classifier_forward, static_argnums=2)
    logits = fwd(x, params, input_size)
    jax.block_until_ready(logits)
    assert logits.shape == (B, n_classes), logits.shape
    print("KERNEL_OK")
</pallas_src>

<mosaic_0001>
module attributes {stable_mosaic.version = 11 : i64} {
  func.func @lstm_cls_kernel(%arg0: memref<128x64xbf16, #tpu.memory_space<vmem>>, %arg1: memref<64x128xbf16, #tpu.memory_space<vmem>>, %arg2: memref<32x128xf32, #tpu.memory_space<vmem>>, %arg3: memref<1x128xf32, #tpu.memory_space<vmem>>, %arg4: memref<32x128xf32, #tpu.memory_space<vmem>>, %arg5: memref<1x128xf32, #tpu.memory_space<vmem>>, %arg6: memref<8x128xf32, #tpu.memory_space<vmem>>) attributes {dimension_semantics = [], scalar_prefetch = 0 : i64, scratch_operands = 0 : i64, tpu.core_type = #tpu.core_type<tc>} {
    %c0 = arith.constant 0 : index
    %c0_0 = arith.constant 0 : index
    %0 = vector.load %arg1[%c0, %c0_0] : memref<64x128xbf16, #tpu.memory_space<vmem>>, vector<64x128xbf16>
    %c0_1 = arith.constant 0 : index
    %c0_2 = arith.constant 0 : index
    %1 = vector.load %arg3[%c0_1, %c0_2] : memref<1x128xf32, #tpu.memory_space<vmem>>, vector<1x128xf32>
    %c0_3 = arith.constant 0 : index
    %c0_4 = arith.constant 0 : index
    %2 = vector.load %arg0[%c0_3, %c0_4] : memref<128x64xbf16, #tpu.memory_space<vmem>>, vector<32x64xbf16>
    %cst = arith.constant dense<0.000000e+00> : vector<32x128xf32>
    %3 = tpu.matmul %2, %0, %cst {dimension_numbers = #tpu.dot_dimension_numbers<[1], [0], [0], [1], [0, 0, 1, 1], [], []>} : vector<32x64xbf16>, vector<64x128xbf16>, vector<32x128xf32> -> vector<32x128xf32>
    %4 = vector.broadcast %1 : vector<1x128xf32> to vector<32x128xf32>
    %5 = arith.addf %3, %4 : vector<32x128xf32>
    %c32 = arith.constant 32 : index
    %c0_5 = arith.constant 0 : index
    %6 = vector.load %arg0[%c32, %c0_5] : memref<128x64xbf16, #tpu.memory_space<vmem>>, vector<32x64xbf16>
    %cst_6 = arith.constant dense<0.000000e+00> : vector<32x128xf32>
    %7 = tpu.matmul %6, %0, %cst_6 {dimension_numbers = #tpu.dot_dimension_numbers<[1], [0], [0], [1], [0, 0, 1, 1], [], []>} : vector<32x64xbf16>, vector<64x128xbf16>, vector<32x128xf32> -> vector<32x128xf32>
    %8 = vector.broadcast %1 : vector<1x128xf32> to vector<32x128xf32>
    %9 = arith.addf %7, %8 : vector<32x128xf32>
    %c64 = arith.constant 64 : index
    %c0_7 = arith.constant 0 : index
    %10 = vector.load %arg0[%c64, %c0_7] : memref<128x64xbf16, #tpu.memory_space<vmem>>, vector<32x64xbf16>
    %cst_8 = arith.constant dense<0.000000e+00> : vector<32x128xf32>
    %11 = tpu.matmul %10, %0, %cst_8 {dimension_numbers = #tpu.dot_dimension_numbers<[1], [0], [0], [1], [0, 0, 1, 1], [], []>} : vector<32x64xbf16>, vector<64x128xbf16>, vector<32x128xf32> -> vector<32x128xf32>
    %12 = vector.broadcast %1 : vector<1x128xf32> to vector<32x128xf32>
    %13 = arith.addf %11, %12 : vector<32x128xf32>
    %c96 = arith.constant 96 : index
    %c0_9 = arith.constant 0 : index
    %14 = vector.load %arg0[%c96, %c0_9] : memref<128x64xbf16, #tpu.memory_space<vmem>>, vector<32x64xbf16>
    %cst_10 = arith.constant dense<0.000000e+00> : vector<32x128xf32>
    %15 = tpu.matmul %14, %0, %cst_10 {dimension_numbers = #tpu.dot_dimension_numbers<[1], [0], [0], [1], [0, 0, 1, 1], [], []>} : vector<32x64xbf16>, vector<64x128xbf16>, vector<32x128xf32> -> vector<32x128xf32>
    %16 = vector.broadcast %1 : vector<1x128xf32> to vector<32x128xf32>
    %17 = arith.addf %15, %16 : vector<32x128xf32>
    %c0_11 = arith.constant 0 : index
    %c0_12 = arith.constant 0 : index
    %18 = vector.load %arg2[%c0_11, %c0_12] : memref<32x128xf32, #tpu.memory_space<vmem>>, vector<32x128xf32>
    %19 = tpu.iota {dimensions = array<i32: 1>} : vector<8x128xi32>
    %c64_i32 = arith.constant 64 : i32
    %20 = vector.broadcast %c64_i32 : i32 to vector<8x128xi32>
    %21 = arith.cmpi sge, %19, %20 : vector<8x128xi32>
    %c96_i32 = arith.constant 96 : i32
    %22 = vector.broadcast %c96_i32 : i32 to vector<8x128xi32>
    %23 = arith.cmpi slt, %19, %22 : vector<8x128xi32>
    %24 = arith.andi %21, %23 : vector<8x128xi1>
    %cst_13 = arith.constant -2.000000e+00 : f32
    %cst_14 = arith.constant -1.000000e+00 : f32
    %25 = vector.broadcast %cst_13 : f32 to vector<8x128xf32>
    %26 = vector.broadcast %cst_14 : f32 to vector<8x128xf32>
    %27 = arith.select %24, %25, %26 : vector<8x128xi1>, vector<8x128xf32>
    %cst_15 = arith.constant 2.000000e+00 : f32
    %cst_16 = arith.constant 1.000000e+00 : f32
    %28 = vector.broadcast %cst_15 : f32 to vector<8x128xf32>
    %29 = vector.broadcast %cst_16 : f32 to vector<8x128xf32>
    %30 = arith.select %24, %28, %29 : vector<8x128xi1>, vector<8x128xf32>
    %cst_17 = arith.constant -1.000000e+00 : f32
    %cst_18 = arith.constant 0.000000e+00 : f32
    %31 = vector.broadcast %cst_17 : f32 to vector<8x128xf32>
    %32 = vector.broadcast %cst_18 : f32 to vector<8x128xf32>
    %33 = arith.select %24, %31, %32 : vector<8x128xi1>, vector<8x128xf32>
    %cst_19 = arith.constant 0.000000e+00 : f32
    %34 = vector.broadcast %cst_19 : f32 to vector<8x32xf32>
    %cst_20 = arith.constant 0.000000e+00 : f32
    %35 = vector.broadcast %cst_20 : f32 to vector<8x32xf32>
    %36 = vector.extract_strided_slice %5 {offsets = [0, 0], sizes = [8, 128], strides = [1, 1]} : vector<32x128xf32> to vector<8x128xf32>
    %cst_21 = arith.constant dense<0.000000e+00> : vector<8x128xf32>
    %37 = tpu.matmul %34, %18, %cst_21 {dimension_numbers = #tpu.dot_dimension_numbers<[1], [0], [0], [1], [0, 0, 1, 1], [], []>} : vector<8x32xf32>, vector<32x128xf32>, vector<8x128xf32> -> vector<8x128xf32>
    %38 = arith.addf %36, %37 : vector<8x128xf32>
    %39 = arith.mulf %38, %27 : vector<8x128xf32>
    %40 = math.exp %39 : vector<8x128xf32>
    %cst_22 = arith.constant 1.000000e+00 : f32
    %41 = vector.broadcast %cst_22 : f32 to vector<8x128xf32>
    %42 = arith.addf %41, %40 : vector<8x128xf32>
    %43 = tpu.reciprocal %42 {approx = true} : vector<8x128xf32> -> vector<8x128xf32>
    %44 = arith.mulf %43, %30 : vector<8x128xf32>
    %45 = arith.addf %44, %33 : vector<8x128xf32>
    %46 = vector.extract_strided_slice %45 {offsets = [0, 0], sizes = [8, 32], strides = [1, 1]} : vector<8x128xf32> to vector<8x32xf32>
    %47 = vector.extract_strided_slice %45 {offsets = [0, 32], sizes = [8, 32], strides = [1, 1]} : vector<8x128xf32> to vector<8x32xf32>
    %48 = vector.extract_strided_slice %45 {offsets = [0, 64], sizes = [8, 32], strides = [1, 1]} : vector<8x128xf32> to vector<8x32xf32>
    %49 = vector.extract_strided_slice %45 {offsets = [0, 96], sizes = [8, 32], strides = [1, 1]} : vector<8x128xf32> to vector<8x32xf32>
    %50 = arith.mulf %47, %35 : vector<8x32xf32>
    %51 = arith.mulf %46, %48 : vector<8x32xf32>
    %52 = arith.addf %50, %51 : vector<8x32xf32>
    %53 = math.tanh %52 : vector<8x32xf32>
    %54 = arith.mulf %49, %53 : vector<8x32xf32>
    %55 = vector.extract_strided_slice %5 {offsets = [8, 0], sizes = [8, 128], strides = [1, 1]} : vector<32x128xf32> to vector<8x128xf32>
    %cst_23 = arith.constant dense<0.000000e+00> : vector<8x128xf32>
    %56 = tpu.matmul %54, %18, %cst_23 {dimension_numbers = #tpu.dot_dimension_numbers<[1], [0], [0], [1], [0, 0, 1, 1], [], []>} : vector<8x32xf32>, vector<32x128xf32>, vector<8x128xf32> -> vector<8x128xf32>
    %57 = arith.addf %55, %56 : vector<8x128xf32>
    %58 = arith.mulf %57, %27 : vector<8x128xf32>
    %59 = math.exp %58 : vector<8x128xf32>
    %cst_24 = arith.constant 1.000000e+00 : f32
    %60 = vector.broadcast %cst_24 : f32 to vector<8x128xf32>
    %61 = arith.addf %60, %59 : vector<8x128xf32>
    %62 = tpu.reciprocal %61 {approx = true} : vector<8x128xf32> -> vector<8x128xf32>
    %63 = arith.mulf %62, %30 : vector<8x128xf32>
    %64 = arith.addf %63, %33 : vector<8x128xf32>
    %65 = vector.extract_strided_slice %64 {offsets = [0, 0], sizes = [8, 32], strides = [1, 1]} : vector<8x128xf32> to vector<8x32xf32>
    %66 = vector.extract_strided_slice %64 {offsets = [0, 32], sizes = [8, 32], strides = [1, 1]} : vector<8x128xf32> to vector<8x32xf32>
    %67 = vector.extract_strided_slice %64 {offsets = [0, 64], sizes = [8, 32], strides = [1, 1]} : vector<8x128xf32> to vector<8x32xf32>
    %68 = vector.extract_strided_slice %64 {offsets = [0, 96], sizes = [8, 32], strides = [1, 1]} : vector<8x128xf32> to vector<8x32xf32>
    %69 = arith.mulf %66, %52 : vector<8x32xf32>
    %70 = arith.mulf %65, %67 : vector<8x32xf32>
    %71 = arith.addf %69, %70 : vector<8x32xf32>
    %72 = math.tanh %71 : vector<8x32xf32>
    %73 = arith.mulf %68, %72 : vector<8x32xf32>
    %74 = vector.extract_strided_slice %5 {offsets = [16, 0], sizes = [8, 128], strides = [1, 1]} : vector<32x128xf32> to vector<8x128xf32>
    %cst_25 = arith.constant dense<0.000000e+00> : vector<8x128xf32>
    %75 = tpu.matmul %73, %18, %cst_25 {dimension_numbers = #tpu.dot_dimension_numbers<[1], [0], [0], [1], [0, 0, 1, 1], [], []>} : vector<8x32xf32>, vector<32x128xf32>, vector<8x128xf32> -> vector<8x128xf32>
    %76 = arith.addf %74, %75 : vector<8x128xf32>
    %77 = arith.mulf %76, %27 : vector<8x128xf32>
    %78 = math.exp %77 : vector<8x128xf32>
    %cst_26 = arith.constant 1.000000e+00 : f32
    %79 = vector.broadcast %cst_26 : f32 to vector<8x128xf32>
    %80 = arith.addf %79, %78 : vector<8x128xf32>
    %81 = tpu.reciprocal %80 {approx = true} : vector<8x128xf32> -> vector<8x128xf32>
    %82 = arith.mulf %81, %30 : vector<8x128xf32>
    %83 = arith.addf %82, %33 : vector<8x128xf32>
    %84 = vector.extract_strided_slice %83 {offsets = [0, 0], sizes = [8, 32], strides = [1, 1]} : vector<8x128xf32> to vector<8x32xf32>
    %85 = vector.extract_strided_slice %83 {offsets = [0, 32], sizes = [8, 32], strides = [1, 1]} : vector<8x128xf32> to vector<8x32xf32>
    %86 = vector.extract_strided_slice %83 {offsets = [0, 64], sizes = [8, 32], strides = [1, 1]} : vector<8x128xf32> to vector<8x32xf32>
    %87 = vector.extract_strided_slice %83 {offsets = [0, 96], sizes = [8, 32], strides = [1, 1]} : vector<8x128xf32> to vector<8x32xf32>
    %88 = arith.mulf %85, %71 : vector<8x32xf32>
    %89 = arith.mulf %84, %86 : vector<8x32xf32>
    %90 = arith.addf %88, %89 : vector<8x32xf32>
    %91 = math.tanh %90 : vector<8x32xf32>
    %92 = arith.mulf %87, %91 : vector<8x32xf32>
    %93 = vector.extract_strided_slice %5 {offsets = [24, 0], sizes = [8, 128], strides = [1, 1]} : vector<32x128xf32> to vector<8x128xf32>
    %cst_27 = arith.constant dense<0.000000e+00> : vector<8x128xf32>
    %94 = tpu.matmul %92, %18, %cst_27 {dimension_numbers = #tpu.dot_dimension_numbers<[1], [0], [0], [1], [0, 0, 1, 1], [], []>} : vector<8x32xf32>, vector<32x128xf32>, vector<8x128xf32> -> vector<8x128xf32>
    %95 = arith.addf %93, %94 : vector<8x128xf32>
    %96 = arith.mulf %95, %27 : vector<8x128xf32>
    %97 = math.exp %96 : vector<8x128xf32>
    %cst_28 = arith.constant 1.000000e+00 : f32
    %98 = vector.broadcast %cst_28 : f32 to vector<8x128xf32>
    %99 = arith.addf %98, %97 : vector<8x128xf32>
    %100 = tpu.reciprocal %99 {approx = true} : vector<8x128xf32> -> vector<8x128xf32>
    %101 = arith.mulf %100, %30 : vector<8x128xf32>
    %102 = arith.addf %101, %33 : vector<8x128xf32>
    %103 = vector.extract_strided_slice %102 {offsets = [0, 0], sizes = [8, 32], strides = [1, 1]} : vector<8x128xf32> to vector<8x32xf32>
    %104 = vector.extract_strided_slice %102 {offsets = [0, 32], sizes = [8, 32], strides = [1, 1]} : vector<8x128xf32> to vector<8x32xf32>
    %105 = vector.extract_strided_slice %102 {offsets = [0, 64], sizes = [8, 32], strides = [1, 1]} : vector<8x128xf32> to vector<8x32xf32>
    %106 = vector.extract_strided_slice %102 {offsets = [0, 96], sizes = [8, 32], strides = [1, 1]} : vector<8x128xf32> to vector<8x32xf32>
    %107 = arith.mulf %104, %90 : vector<8x32xf32>
    %108 = arith.mulf %103, %105 : vector<8x32xf32>
    %109 = arith.addf %107, %108 : vector<8x32xf32>
    %110 = math.tanh %109 : vector<8x32xf32>
    %111 = arith.mulf %106, %110 : vector<8x32xf32>
    %112 = vector.extract_strided_slice %9 {offsets = [0, 0], sizes = [8, 128], strides = [1, 1]} : vector<32x128xf32> to vector<8x128xf32>
    %cst_29 = arith.constant dense<0.000000e+00> : vector<8x128xf32>
    %113 = tpu.matmul %111, %18, %cst_29 {dimension_numbers = #tpu.dot_dimension_numbers<[1], [0], [0], [1], [0, 0, 1, 1], [], []>} : vector<8x32xf32>, vector<32x128xf32>, vector<8x128xf32> -> vector<8x128xf32>
    %114 = arith.addf %112, %113 : vector<8x128xf32>
    %115 = arith.mulf %114, %27 : vector<8x128xf32>
    %116 = math.exp %115 : vector<8x128xf32>
    %cst_30 = arith.constant 1.000000e+00 : f32
    %117 = vector.broadcast %cst_30 : f32 to vector<8x128xf32>
    %118 = arith.addf %117, %116 : vector<8x128xf32>
    %119 = tpu.reciprocal %118 {approx = true} : vector<8x128xf32> -> vector<8x128xf32>
    %120 = arith.mulf %119, %30 : vector<8x128xf32>
    %121 = arith.addf %120, %33 : vector<8x128xf32>
    %122 = vector.extract_strided_slice %121 {offsets = [0, 0], sizes = [8, 32], strides = [1, 1]} : vector<8x128xf32> to vector<8x32xf32>
    %123 = vector.extract_strided_slice %121 {offsets = [0, 32], sizes = [8, 32], strides = [1, 1]} : vector<8x128xf32> to vector<8x32xf32>
    %124 = vector.extract_strided_slice %121 {offsets = [0, 64], sizes = [8, 32], strides = [1, 1]} : vector<8x128xf32> to vector<8x32xf32>
    %125 = vector.extract_strided_slice %121 {offsets = [0, 96], sizes = [8, 32], strides = [1, 1]} : vector<8x128xf32> to vector<8x32xf32>
    %126 = arith.mulf %123, %109 : vector<8x32xf32>
    %127 = arith.mulf %122, %124 : vector<8x32xf32>
    %128 = arith.addf %126, %127 : vector<8x32xf32>
    %129 = math.tanh %128 : vector<8x32xf32>
    %130 = arith.mulf %125, %129 : vector<8x32xf32>
    %131 = vector.extract_strided_slice %9 {offsets = [8, 0], sizes = [8, 128], strides = [1, 1]} : vector<32x128xf32> to vector<8x128xf32>
    %cst_31 = arith.constant dense<0.000000e+00> : vector<8x128xf32>
    %132 = tpu.matmul %130, %18, %cst_31 {dimension_numbers = #tpu.dot_dimension_numbers<[1], [0], [0], [1], [0, 0, 1, 1], [], []>} : vector<8x32xf32>, vector<32x128xf32>, vector<8x128xf32> -> vector<8x128xf32>
    %133 = arith.addf %131, %132 : vector<8x128xf32>
    %134 = arith.mulf %133, %27 : vector<8x128xf32>
    %135 = math.exp %134 : vector<8x128xf32>
    %cst_32 = arith.constant 1.000000e+00 : f32
    %136 = vector.broadcast %cst_32 : f32 to vector<8x128xf32>
    %137 = arith.addf %136, %135 : vector<8x128xf32>
    %138 = tpu.reciprocal %137 {approx = true} : vector<8x128xf32> -> vector<8x128xf32>
    %139 = arith.mulf %138, %30 : vector<8x128xf32>
    %140 = arith.addf %139, %33 : vector<8x128xf32>
    %141 = vector.extract_strided_slice %140 {offsets = [0, 0], sizes = [8, 32], strides = [1, 1]} : vector<8x128xf32> to vector<8x32xf32>
    %142 = vector.extract_strided_slice %140 {offsets = [0, 32], sizes = [8, 32], strides = [1, 1]} : vector<8x128xf32> to vector<8x32xf32>
    %143 = vector.extract_strided_slice %140 {offsets = [0, 64], sizes = [8, 32], strides = [1, 1]} : vector<8x128xf32> to vector<8x32xf32>
    %144 = vector.extract_strided_slice %140 {offsets = [0, 96], sizes = [8, 32], strides = [1, 1]} : vector<8x128xf32> to vector<8x32xf32>
    %145 = arith.mulf %142, %128 : vector<8x32xf32>
    %146 = arith.mulf %141, %143 : vector<8x32xf32>
    %147 = arith.addf %145, %146 : vector<8x32xf32>
    %148 = math.tanh %147 : vector<8x32xf32>
    %149 = arith.mulf %144, %148 : vector<8x32xf32>
    %150 = vector.extract_strided_slice %9 {offsets = [16, 0], sizes = [8, 128], strides = [1, 1]} : vector<32x128xf32> to vector<8x128xf32>
    %cst_33 = arith.constant dense<0.000000e+00> : vector<8x128xf32>
    %151 = tpu.matmul %149, %18, %cst_33 {dimension_numbers = #tpu.dot_dimension_numbers<[1], [0], [0], [1], [0, 0, 1, 1], [], []>} : vector<8x32xf32>, vector<32x128xf32>, vector<8x128xf32> -> vector<8x128xf32>
    %152 = arith.addf %150, %151 : vector<8x128xf32>
    %153 = arith.mulf %152, %27 : vector<8x128xf32>
    %154 = math.exp %153 : vector<8x128xf32>
    %cst_34 = arith.constant 1.000000e+00 : f32
    %155 = vector.broadcast %cst_34 : f32 to vector<8x128xf32>
    %156 = arith.addf %155, %154 : vector<8x128xf32>
    %157 = tpu.reciprocal %156 {approx = true} : vector<8x128xf32> -> vector<8x128xf32>
    %158 = arith.mulf %157, %30 : vector<8x128xf32>
    %159 = arith.addf %158, %33 : vector<8x128xf32>
    %160 = vector.extract_strided_slice %159 {offsets = [0, 0], sizes = [8, 32], strides = [1, 1]} : vector<8x128xf32> to vector<8x32xf32>
    %161 = vector.extract_strided_slice %159 {offsets = [0, 32], sizes = [8, 32], strides = [1, 1]} : vector<8x128xf32> to vector<8x32xf32>
    %162 = vector.extract_strided_slice %159 {offsets = [0, 64], sizes = [8, 32], strides = [1, 1]} : vector<8x128xf32> to vector<8x32xf32>
    %163 = vector.extract_strided_slice %159 {offsets = [0, 96], sizes = [8, 32], strides = [1, 1]} : vector<8x128xf32> to vector<8x32xf32>
    %164 = arith.mulf %161, %147 : vector<8x32xf32>
    %165 = arith.mulf %160, %162 : vector<8x32xf32>
    %166 = arith.addf %164, %165 : vector<8x32xf32>
    %167 = math.tanh %166 : vector<8x32xf32>
    %168 = arith.mulf %163, %167 : vector<8x32xf32>
    %169 = vector.extract_strided_slice %9 {offsets = [24, 0], sizes = [8, 128], strides = [1, 1]} : vector<32x128xf32> to vector<8x128xf32>
    %cst_35 = arith.constant dense<0.000000e+00> : vector<8x128xf32>
    %170 = tpu.matmul %168, %18, %cst_35 {dimension_numbers = #tpu.dot_dimension_numbers<[1], [0], [0], [1], [0, 0, 1, 1], [], []>} : vector<8x32xf32>, vector<32x128xf32>, vector<8x128xf32> -> vector<8x128xf32>
    %171 = arith.addf %169, %170 : vector<8x128xf32>
    %172 = arith.mulf %171, %27 : vector<8x128xf32>
    %173 = math.exp %172 : vector<8x128xf32>
    %cst_36 = arith.constant 1.000000e+00 : f32
    %174 = vector.broadcast %cst_36 : f32 to vector<8x128xf32>
    %175 = arith.addf %174, %173 : vector<8x128xf32>
    %176 = tpu.reciprocal %175 {approx = true} : vector<8x128xf32> -> vector<8x128xf32>
    %177 = arith.mulf %176, %30 : vector<8x128xf32>
    %178 = arith.addf %177, %33 : vector<8x128xf32>
    %179 = vector.extract_strided_slice %178 {offsets = [0, 0], sizes = [8, 32], strides = [1, 1]} : vector<8x128xf32> to vector<8x32xf32>
    %180 = vector.extract_strided_slice %178 {offsets = [0, 32], sizes = [8, 32], strides = [1, 1]} : vector<8x128xf32> to vector<8x32xf32>
    %181 = vector.extract_strided_slice %178 {offsets = [0, 64], sizes = [8, 32], strides = [1, 1]} : vector<8x128xf32> to vector<8x32xf32>
    %182 = vector.extract_strided_slice %178 {offsets = [0, 96], sizes = [8, 32], strides = [1, 1]} : vector<8x128xf32> to vector<8x32xf32>
    %183 = arith.mulf %180, %166 : vector<8x32xf32>
    %184 = arith.mulf %179, %181 : vector<8x32xf32>
    %185 = arith.addf %183, %184 : vector<8x32xf32>
    %186 = math.tanh %185 : vector<8x32xf32>
    %187 = arith.mulf %182, %186 : vector<8x32xf32>
    %188 = vector.extract_strided_slice %13 {offsets = [0, 0], sizes = [8, 128], strides = [1, 1]} : vector<32x128xf32> to vector<8x128xf32>
    %cst_37 = arith.constant dense<0.000000e+00> : vector<8x128xf32>
    %189 = tpu.matmul %187, %18, %cst_37 {dimension_numbers = #tpu.dot_dimension_numbers<[1], [0], [0], [1], [0, 0, 1, 1], [], []>} : vector<8x32xf32>, vector<32x128xf32>, vector<8x128xf32> -> vector<8x128xf32>
    %190 = arith.addf %188, %189 : vector<8x128xf32>
    %191 = arith.mulf %190, %27 : vector<8x128xf32>
    %192 = math.exp %191 : vector<8x128xf32>
    %cst_38 = arith.constant 1.000000e+00 : f32
    %193 = vector.broadcast %cst_38 : f32 to vector<8x128xf32>
    %194 = arith.addf %193, %192 : vector<8x128xf32>
    %195 = tpu.reciprocal %194 {approx = true} : vector<8x128xf32> -> vector<8x128xf32>
    %196 = arith.mulf %195, %30 : vector<8x128xf32>
    %197 = arith.addf %196, %33 : vector<8x128xf32>
    %198 = vector.extract_strided_slice %197 {offsets = [0, 0], sizes = [8, 32], strides = [1, 1]} : vector<8x128xf32> to vector<8x32xf32>
    %199 = vector.extract_strided_slice %197 {offsets = [0, 32], sizes = [8, 32], strides = [1, 1]} : vector<8x128xf32> to vector<8x32xf32>
    %200 = vector.extract_strided_slice %197 {offsets = [0, 64], sizes = [8, 32], strides = [1, 1]} : vector<8x128xf32> to vector<8x32xf32>
    %201 = vector.extract_strided_slice %197 {offsets = [0, 96], sizes = [8, 32], strides = [1, 1]} : vector<8x128xf32> to vector<8x32xf32>
    %202 = arith.mulf %199, %185 : vector<8x32xf32>
    %203 = arith.mulf %198, %200 : vector<8x32xf32>
    %204 = arith.addf %202, %203 : vector<8x32xf32>
    %205 = math.tanh %204 : vector<8x32xf32>
    %206 = arith.mulf %201, %205 : vector<8x32xf32>
    %207 = vector.extract_strided_slice %13 {offsets = [8, 0], sizes = [8, 128], strides = [1, 1]} : vector<32x128xf32> to vector<8x128xf32>
    %cst_39 = arith.constant dense<0.000000e+00> : vector<8x128xf32>
    %208 = tpu.matmul %206, %18, %cst_39 {dimension_numbers = #tpu.dot_dimension_numbers<[1], [0], [0], [1], [0, 0, 1, 1], [], []>} : vector<8x32xf32>, vector<32x128xf32>, vector<8x128xf32> -> vector<8x128xf32>
    %209 = arith.addf %207, %208 : vector<8x128xf32>
    %210 = arith.mulf %209, %27 : vector<8x128xf32>
    %211 = math.exp %210 : vector<8x128xf32>
    %cst_40 = arith.constant 1.000000e+00 : f32
    %212 = vector.broadcast %cst_40 : f32 to vector<8x128xf32>
    %213 = arith.addf %212, %211 : vector<8x128xf32>
    %214 = tpu.reciprocal %213 {approx = true} : vector<8x128xf32> -> vector<8x128xf32>
    %215 = arith.mulf %214, %30 : vector<8x128xf32>
    %216 = arith.addf %215, %33 : vector<8x128xf32>
    %217 = vector.extract_strided_slice %216 {offsets = [0, 0], sizes = [8, 32], strides = [1, 1]} : vector<8x128xf32> to vector<8x32xf32>
    %218 = vector.extract_strided_slice %216 {offsets = [0, 32], sizes = [8, 32], strides = [1, 1]} : vector<8x128xf32> to vector<8x32xf32>
    %219 = vector.extract_strided_slice %216 {offsets = [0, 64], sizes = [8, 32], strides = [1, 1]} : vector<8x128xf32> to vector<8x32xf32>
    %220 = vector.extract_strided_slice %216 {offsets = [0, 96], sizes = [8, 32], strides = [1, 1]} : vector<8x128xf32> to vector<8x32xf32>
    %221 = arith.mulf %218, %204 : vector<8x32xf32>
    %222 = arith.mulf %217, %219 : vector<8x32xf32>
    %223 = arith.addf %221, %222 : vector<8x32xf32>
    %224 = math.tanh %223 : vector<8x32xf32>
    %225 = arith.mulf %220, %224 : vector<8x32xf32>
    %226 = vector.extract_strided_slice %13 {offsets = [16, 0], sizes = [8, 128], strides = [1, 1]} : vector<32x128xf32> to vector<8x128xf32>
    %cst_41 = arith.constant dense<0.000000e+00> : vector<8x128xf32>
    %227 = tpu.matmul %225, %18, %cst_41 {dimension_numbers = #tpu.dot_dimension_numbers<[1], [0], [0], [1], [0, 0, 1, 1], [], []>} : vector<8x32xf32>, vector<32x128xf32>, vector<8x128xf32> -> vector<8x128xf32>
    %228 = arith.addf %226, %227 : vector<8x128xf32>
    %229 = arith.mulf %228, %27 : vector<8x128xf32>
    %230 = math.exp %229 : vector<8x128xf32>
    %cst_42 = arith.constant 1.000000e+00 : f32
    %231 = vector.broadcast %cst_42 : f32 to vector<8x128xf32>
    %232 = arith.addf %231, %230 : vector<8x128xf32>
    %233 = tpu.reciprocal %232 {approx = true} : vector<8x128xf32> -> vector<8x128xf32>
    %234 = arith.mulf %233, %30 : vector<8x128xf32>
    %235 = arith.addf %234, %33 : vector<8x128xf32>
    %236 = vector.extract_strided_slice %235 {offsets = [0, 0], sizes = [8, 32], strides = [1, 1]} : vector<8x128xf32> to vector<8x32xf32>
    %237 = vector.extract_strided_slice %235 {offsets = [0, 32], sizes = [8, 32], strides = [1, 1]} : vector<8x128xf32> to vector<8x32xf32>
    %238 = vector.extract_strided_slice %235 {offsets = [0, 64], sizes = [8, 32], strides = [1, 1]} : vector<8x128xf32> to vector<8x32xf32>
    %239 = vector.extract_strided_slice %235 {offsets = [0, 96], sizes = [8, 32], strides = [1, 1]} : vector<8x128xf32> to vector<8x32xf32>
    %240 = arith.mulf %237, %223 : vector<8x32xf32>
    %241 = arith.mulf %236, %238 : vector<8x32xf32>
    %242 = arith.addf %240, %241 : vector<8x32xf32>
    %243 = math.tanh %242 : vector<8x32xf32>
    %244 = arith.mulf %239, %243 : vector<8x32xf32>
    %245 = vector.extract_strided_slice %13 {offsets = [24, 0], sizes = [8, 128], strides = [1, 1]} : vector<32x128xf32> to vector<8x128xf32>
    %cst_43 = arith.constant dense<0.000000e+00> : vector<8x128xf32>
    %246 = tpu.matmul %244, %18, %cst_43 {dimension_numbers = #tpu.dot_dimension_numbers<[1], [0], [0], [1], [0, 0, 1, 1], [], []>} : vector<8x32xf32>, vector<32x128xf32>, vector<8x128xf32> -> vector<8x128xf32>
    %247 = arith.addf %245, %246 : vector<8x128xf32>
    %248 = arith.mulf %247, %27 : vector<8x128xf32>
    %249 = math.exp %248 : vector<8x128xf32>
    %cst_44 = arith.constant 1.000000e+00 : f32
    %250 = vector.broadcast %cst_44 : f32 to vector<8x128xf32>
    %251 = arith.addf %250, %249 : vector<8x128xf32>
    %252 = tpu.reciprocal %251 {approx = true} : vector<8x128xf32> -> vector<8x128xf32>
    %253 = arith.mulf %252, %30 : vector<8x128xf32>
    %254 = arith.addf %253, %33 : vector<8x128xf32>
    %255 = vector.extract_strided_slice %254 {offsets = [0, 0], sizes = [8, 32], strides = [1, 1]} : vector<8x128xf32> to vector<8x32xf32>
    %256 = vector.extract_strided_slice %254 {offsets = [0, 32], sizes = [8, 32], strides = [1, 1]} : vector<8x128xf32> to vector<8x32xf32>
    %257 = vector.extract_strided_slice %254 {offsets = [0, 64], sizes = [8, 32], strides = [1, 1]} : vector<8x128xf32> to vector<8x32xf32>
    %258 = vector.extract_strided_slice %254 {offsets = [0, 96], sizes = [8, 32], strides = [1, 1]} : vector<8x128xf32> to vector<8x32xf32>
    %259 = arith.mulf %256, %242 : vector<8x32xf32>
    %260 = arith.mulf %255, %257 : vector<8x32xf32>
    %261 = arith.addf %259, %260 : vector<8x32xf32>
    %262 = math.tanh %261 : vector<8x32xf32>
    %263 = arith.mulf %258, %262 : vector<8x32xf32>
    %264 = vector.extract_strided_slice %17 {offsets = [0, 0], sizes = [8, 128], strides = [1, 1]} : vector<32x128xf32> to vector<8x128xf32>
    %cst_45 = arith.constant dense<0.000000e+00> : vector<8x128xf32>
    %265 = tpu.matmul %263, %18, %cst_45 {dimension_numbers = #tpu.dot_dimension_numbers<[1], [0], [0], [1], [0, 0, 1, 1], [], []>} : vector<8x32xf32>, vector<32x128xf32>, vector<8x128xf32> -> vector<8x128xf32>
    %266 = arith.addf %264, %265 : vector<8x128xf32>
    %267 = arith.mulf %266, %27 : vector<8x128xf32>
    %268 = math.exp %267 : vector<8x128xf32>
    %cst_46 = arith.constant 1.000000e+00 : f32
    %269 = vector.broadcast %cst_46 : f32 to vector<8x128xf32>
    %270 = arith.addf %269, %268 : vector<8x128xf32>
    %271 = tpu.reciprocal %270 {approx = true} : vector<8x128xf32> -> vector<8x128xf32>
    %272 = arith.mulf %271, %30 : vector<8x128xf32>
    %273 = arith.addf %272, %33 : vector<8x128xf32>
    %274 = vector.extract_strided_slice %273 {offsets = [0, 0], sizes = [8, 32], strides = [1, 1]} : vector<8x128xf32> to vector<8x32xf32>
    %275 = vector.extract_strided_slice %273 {offsets = [0, 32], sizes = [8, 32], strides = [1, 1]} : vector<8x128xf32> to vector<8x32xf32>
    %276 = vector.extract_strided_slice %273 {offsets = [0, 64], sizes = [8, 32], strides = [1, 1]} : vector<8x128xf32> to vector<8x32xf32>
    %277 = vector.extract_strided_slice %273 {offsets = [0, 96], sizes = [8, 32], strides = [1, 1]} : vector<8x128xf32> to vector<8x32xf32>
    %278 = arith.mulf %275, %261 : vector<8x32xf32>
    %279 = arith.mulf %274, %276 : vector<8x32xf32>
    %280 = arith.addf %278, %279 : vector<8x32xf32>
    %281 = math.tanh %280 : vector<8x32xf32>
    %282 = arith.mulf %277, %281 : vector<8x32xf32>
    %283 = vector.extract_strided_slice %17 {offsets = [8, 0], sizes = [8, 128], strides = [1, 1]} : vector<32x128xf32> to vector<8x128xf32>
    %cst_47 = arith.constant dense<0.000000e+00> : vector<8x128xf32>
    %284 = tpu.matmul %282, %18, %cst_47 {dimension_numbers = #tpu.dot_dimension_numbers<[1], [0], [0], [1], [0, 0, 1, 1], [], []>} : vector<8x32xf32>, vector<32x128xf32>, vector<8x128xf32> -> vector<8x128xf32>
    %285 = arith.addf %283, %284 : vector<8x128xf32>
    %286 = arith.mulf %285, %27 : vector<8x128xf32>
    %287 = math.exp %286 : vector<8x128xf32>
    %cst_48 = arith.constant 1.000000e+00 : f32
    %288 = vector.broadcast %cst_48 : f32 to vector<8x128xf32>
    %289 = arith.addf %288, %287 : vector<8x128xf32>
    %290 = tpu.reciprocal %289 {approx = true} : vector<8x128xf32> -> vector<8x128xf32>
    %291 = arith.mulf %290, %30 : vector<8x128xf32>
    %292 = arith.addf %291, %33 : vector<8x128xf32>
    %293 = vector.extract_strided_slice %292 {offsets = [0, 0], sizes = [8, 32], strides = [1, 1]} : vector<8x128xf32> to vector<8x32xf32>
    %294 = vector.extract_strided_slice %292 {offsets = [0, 32], sizes = [8, 32], strides = [1, 1]} : vector<8x128xf32> to vector<8x32xf32>
    %295 = vector.extract_strided_slice %292 {offsets = [0, 64], sizes = [8, 32], strides = [1, 1]} : vector<8x128xf32> to vector<8x32xf32>
    %296 = vector.extract_strided_slice %292 {offsets = [0, 96], sizes = [8, 32], strides = [1, 1]} : vector<8x128xf32> to vector<8x32xf32>
    %297 = arith.mulf %294, %280 : vector<8x32xf32>
    %298 = arith.mulf %293, %295 : vector<8x32xf32>
    %299 = arith.addf %297, %298 : vector<8x32xf32>
    %300 = math.tanh %299 : vector<8x32xf32>
    %301 = arith.mulf %296, %300 : vector<8x32xf32>
    %302 = vector.extract_strided_slice %17 {offsets = [16, 0], sizes = [8, 128], strides = [1, 1]} : vector<32x128xf32> to vector<8x128xf32>
    %cst_49 = arith.constant dense<0.000000e+00> : vector<8x128xf32>
    %303 = tpu.matmul %301, %18, %cst_49 {dimension_numbers = #tpu.dot_dimension_numbers<[1], [0], [0], [1], [0, 0, 1, 1], [], []>} : vector<8x32xf32>, vector<32x128xf32>, vector<8x128xf32> -> vector<8x128xf32>
    %304 = arith.addf %302, %303 : vector<8x128xf32>
    %305 = arith.mulf %304, %27 : vector<8x128xf32>
    %306 = math.exp %305 : vector<8x128xf32>
    %cst_50 = arith.constant 1.000000e+00 : f32
    %307 = vector.broadcast %cst_50 : f32 to vector<8x128xf32>
    %308 = arith.addf %307, %306 : vector<8x128xf32>
    %309 = tpu.reciprocal %308 {approx = true} : vector<8x128xf32> -> vector<8x128xf32>
    %310 = arith.mulf %309, %30 : vector<8x128xf32>
    %311 = arith.addf %310, %33 : vector<8x128xf32>
    %312 = vector.extract_strided_slice %311 {offsets = [0, 0], sizes = [8, 32], strides = [1, 1]} : vector<8x128xf32> to vector<8x32xf32>
    %313 = vector.extract_strided_slice %311 {offsets = [0, 32], sizes = [8, 32], strides = [1, 1]} : vector<8x128xf32> to vector<8x32xf32>
    %314 = vector.extract_strided_slice %311 {offsets = [0, 64], sizes = [8, 32], strides = [1, 1]} : vector<8x128xf32> to vector<8x32xf32>
    %315 = vector.extract_strided_slice %311 {offsets = [0, 96], sizes = [8, 32], strides = [1, 1]} : vector<8x128xf32> to vector<8x32xf32>
    %316 = arith.mulf %313, %299 : vector<8x32xf32>
    %317 = arith.mulf %312, %314 : vector<8x32xf32>
    %318 = arith.addf %316, %317 : vector<8x32xf32>
    %319 = math.tanh %318 : vector<8x32xf32>
    %320 = arith.mulf %315, %319 : vector<8x32xf32>
    %321 = vector.extract_strided_slice %17 {offsets = [24, 0], sizes = [8, 128], strides = [1, 1]} : vector<32x128xf32> to vector<8x128xf32>
    %cst_51 = arith.constant dense<0.000000e+00> : vector<8x128xf32>
    %322 = tpu.matmul %320, %18, %cst_51 {dimension_numbers = #tpu.dot_dimension_numbers<[1], [0], [0], [1], [0, 0, 1, 1], [], []>} : vector<8x32xf32>, vector<32x128xf32>, vector<8x128xf32> -> vector<8x128xf32>
    %323 = arith.addf %321, %322 : vector<8x128xf32>
    %324 = arith.mulf %323, %27 : vector<8x128xf32>
    %325 = math.exp %324 : vector<8x128xf32>
    %cst_52 = arith.constant 1.000000e+00 : f32
    %326 = vector.broadcast %cst_52 : f32 to vector<8x128xf32>
    %327 = arith.addf %326, %325 : vector<8x128xf32>
    %328 = tpu.reciprocal %327 {approx = true} : vector<8x128xf32> -> vector<8x128xf32>
    %329 = arith.mulf %328, %30 : vector<8x128xf32>
    %330 = arith.addf %329, %33 : vector<8x128xf32>
    %331 = vector.extract_strided_slice %330 {offsets = [0, 0], sizes = [8, 32], strides = [1, 1]} : vector<8x128xf32> to vector<8x32xf32>
    %332 = vector.extract_strided_slice %330 {offsets = [0, 32], sizes = [8, 32], strides = [1, 1]} : vector<8x128xf32> to vector<8x32xf32>
    %333 = vector.extract_strided_slice %330 {offsets = [0, 64], sizes = [8, 32], strides = [1, 1]} : vector<8x128xf32> to vector<8x32xf32>
    %334 = vector.extract_strided_slice %330 {offsets = [0, 96], sizes = [8, 32], strides = [1, 1]} : vector<8x128xf32> to vector<8x32xf32>
    %335 = arith.mulf %332, %318 : vector<8x32xf32>
    %336 = arith.mulf %331, %333 : vector<8x32xf32>
    %337 = arith.addf %335, %336 : vector<8x32xf32>
    %338 = math.tanh %337 : vector<8x32xf32>
    %339 = arith.mulf %334, %338 : vector<8x32xf32>
    %c0_53 = arith.constant 0 : index
    %c0_54 = arith.constant 0 : index
    %340 = vector.load %arg4[%c0_53, %c0_54] : memref<32x128xf32, #tpu.memory_space<vmem>>, vector<32x128xf32>
    %cst_55 = arith.constant dense<0.000000e+00> : vector<8x128xf32>
    %341 = tpu.matmul %339, %340, %cst_55 {dimension_numbers = #tpu.dot_dimension_numbers<[1], [0], [0], [1], [0, 0, 1, 1], [], []>} : vector<8x32xf32>, vector<32x128xf32>, vector<8x128xf32> -> vector<8x128xf32>
    %c0_56 = arith.constant 0 : index
    %c0_57 = arith.constant 0 : index
    %342 = vector.load %arg5[%c0_56, %c0_57] : memref<1x128xf32, #tpu.memory_space<vmem>>, vector<1x128xf32>
    %343 = vector.broadcast %342 : vector<1x128xf32> to vector<8x128xf32>
    %344 = arith.addf %341, %343 : vector<8x128xf32>
    %c0_58 = arith.constant 0 : index
    %c0_59 = arith.constant 0 : index
    %345 = vector.load %arg6[%c0_58, %c0_59] : memref<8x128xf32, #tpu.memory_space<vmem>>, vector<8x128xf32>
    tpu.vector_store %arg6[%c0_58, %c0_59], %344 {strides = array<i32>} : memref<8x128xf32, #tpu.memory_space<vmem>>, vector<8x128xf32>,
    return
  }
}

</mosaic_0001>

<bundles_post_ra>
// kernel: sequence_classifier_forward.1
= control target key start
LH: loop header
LB: loop body
LE: loop exit
PB: predicated region body
PF: predicated region fallthrough
CT: control target
= control target key end

     0   :  { %vm77_vm0 = vcmask 523264   ;;  %v2642_v11 = vmov 0.0|0.0   ;;  %vm2643_vm1 = vmmov 0   ;;  %v2644_v15 = vmov 0.0   ;;  %s2647_s21 = smov 64   ;;  %s2648_s22 = smov 32   ;;  %s3116_s1 = inlined_call_operand.vmem [shape: bf16[64,128], index: 1, kind: input, shape index: {}]   ;;  %s3117_s0 = inlined_call_operand.vmem [shape: bf16[128,64], index: 0, kind: input, shape index: {}]   ;;  %s3118_s2 = inlined_call_operand.vmem [shape: f32[32,128], index: 2, kind: input, shape index: {}]   ;;  %s3119_s3 = inlined_call_operand.vmem [shape: f32[1,128], index: 3, kind: input, shape index: {}]   ;;  %s3120_s4 = inlined_call_operand.vmem [shape: f32[32,128], index: 4, kind: input, shape index: {}]   ;;  %s3121_s5 = inlined_call_operand.vmem [shape: f32[1,128], index: 5, kind: input, shape index: {}]   ;;  %s3122_s6 = inlined_call_operand.vmem [shape: f32[8,128], index: 6, kind: output, shape index: {}]  }
   0x1   :  { %v2687_v0 = vld [vmem:[%s3116_s1] sm:$0xff]   ;;  %v2692_v1 = vld [vmem:[%s3116_s1 + $0x8] sm:$0xff]   ;;  %v2700_v2 = vld [vmem:[%s3116_s1 + $0x10] sm:$0xff]   ;;  %v344_v20 = vlaneseq  ;;  %v2645_v29 = vmov -1.0   ;;  %v2646_v38 = vmov 1.0   ;;  %vm352_vm5 = vcmask 261120  }
   0x2   :  { %2189 = vmatprep.subr.bf16.mxu0 %v2687_v0  ;;  %2201 = vmatprep.subr.bf16.mxu1 %v2687_v0  ;;  %v2537_v3 = vld [vmem:[%s3117_s0] sm:$0xff]   ;;  %v2715_v4 = vld [vmem:[%s3116_s1 + $0x18] sm:$0xff]   ;;  %v2538_v5 = vld [vmem:[%s3117_s0 + $0x8] sm:$0xff]  }
   0x3   :  { %2190 = vmatpush3.bf16.msra.mxu0 %v2687_v0  ;;  %2202 = vmatpush3.bf16.msra.mxu1 %v2687_v0  ;;  %v2539_v6 = vld [vmem:[%s3117_s0 + $0x20] sm:$0xff]   ;;  %v341_v8 = vld [vmem:[%s3118_s2 + $0x8] sm:$0xff]  ;;  %v342_v12 = vld [vmem:[%s3118_s2 + $0x10] sm:$0xff]  ;;  %v345_v21 = vand.u32 127, %v344_v20 }
   0x4   :  { %2191 = vmatprep.subr.bf16.mxu0 %v2692_v1  ;;  %2203 = vmatprep.subr.bf16.mxu1 %v2692_v1  ;;  %v340_v7 = vld [vmem:[%s3118_s2] sm:$0xff]  ;;  %v2540_v9 = vld [vmem:[%s3117_s0 + $0x28] sm:$0xff]   ;;  %v343_v13 = vld [vmem:[%s3118_s2 + $0x18] sm:$0xff] }
   0x5   :  { %2197 = vmatprep.mubr.msk.bf16.mxu0 %vm77_vm0, %v2537_v3  ;;  %v2750_v10 = vpack.c.bf16 %v341_v8, %v340_v7  ;;  %v2761_v14 = vpack.c.bf16 %v343_v13, %v342_v12  ;;  %vm346_vm2 = vcmp.ge.s32.totalorder %v345_v21, 64  ;;  %vm347_vm3 = vcmp.lt.s32.totalorder %v345_v21, 96  ;;  %v2792_v26 = vld [vmem:[%s3119_s3] ss:$0 sm:$0xff]  ;;  %v2541_v49 = vld [vmem:[%s3117_s0 + $0x10] sm:$0xff]   ;;  %v2542_v50 = vld [vmem:[%s3117_s0 + $0x18] sm:$0xff]  }
   0x6   :  { %vm2794_vm4 = vmand %vm346_vm2, %vm347_vm3  ;;  %v2543_v51 = vld [vmem:[%s3117_s0 + $0x30] sm:$0xff]   ;;  %2209 = vmatprep.mubr.msk.bf16.mxu1 %vm77_vm0, %v2541_v49  ;;  %v2544_v53 = vld [vmem:[%s3117_s0 + $0x38] sm:$0xff]  }
   0x7   :  { %2192 = vmatpush3.bf16.msra.mxu0 %v2692_v1  ;;  %2204 = vmatpush3.bf16.msra.mxu1 %v2692_v1  ;;  %v2801_v30 = vsel %vm2794_vm4, -2.0, %v2645_v29  ;;  %v2806_v39 = vsel %vm2794_vm4, 2.0, %v2646_v38  ;;  %v2811_v41 = vsel %vm2794_vm4, -1.0, %v2644_v15 }
   0x8   :  { %2193 = vmatprep.subr.bf16.mxu0 %v2700_v2  ;;  %2205 = vmatprep.subr.bf16.mxu1 %v2700_v2 }
   0xb   :  { %2194 = vmatpush3.bf16.msra.mxu0 %v2700_v2  ;;  %2206 = vmatpush3.bf16.msra.mxu1 %v2700_v2 }
   0xc   :  { %2195 = vmatprep.subr.bf16.mxu0 %v2715_v4  ;;  %2207 = vmatprep.subr.bf16.mxu1 %v2715_v4 }
   0xf   :  { %2196 = vmatpush3.bf16.msra.mxu0 %v2715_v4  ;;  %2208 = vmatpush3.bf16.msra.mxu1 %v2715_v4 }
  0x10   :  { %2213 = vmatprep.subr.bf16.mxu0 %v2687_v0  ;;  %2225 = vmatprep.subr.bf16.mxu1 %v2687_v0 }
  0x12   :  { %2198 = vmatmul.mubr.msk.bf16.vlgmr.msra.gmra.mrb[0].mxu0 %vm77_vm0, %v2538_v5  ;;  %2210 = vmatmul.mubr.msk.bf16.vlgmr.msra.gmra.mrb[0].mxu1 %vm77_vm0, %v2542_v50 }
  0x13   :  { %2214 = vmatpush3.bf16.msra.mxu0 %v2687_v0  ;;  %2221 = vmatprep.mubr.msk.bf16.mxu0 %vm77_vm0, %v2539_v6 }
  0x14   :  { %2215 = vmatprep.subr.bf16.mxu0 %v2692_v1  ;;  %2226 = vmatpush3.bf16.msra.mxu1 %v2687_v0 }
  0x15   :  { %2233 = vmatprep.mubr.msk.bf16.mxu1 %vm77_vm0, %v2543_v51  ;;  %2227 = vmatprep.subr.bf16.mxu1 %v2692_v1 }
  0x17   :  { %2216 = vmatpush3.bf16.msra.mxu0 %v2692_v1 }
  0x18   :  { %2217 = vmatprep.subr.bf16.mxu0 %v2700_v2  ;;  %2228 = vmatpush3.bf16.msra.mxu1 %v2692_v1 }
  0x19   :  { %2229 = vmatprep.subr.bf16.mxu1 %v2700_v2 }
  0x1b   :  { %2218 = vmatpush3.bf16.msra.mxu0 %v2700_v2 }
  0x1c   :  { %2219 = vmatprep.subr.bf16.mxu0 %v2715_v4  ;;  %2230 = vmatpush3.bf16.msra.mxu1 %v2700_v2 }
  0x1d   :  { %2231 = vmatprep.subr.bf16.mxu1 %v2715_v4 }
  0x1f   :  { %2220 = vmatpush3.bf16.msra.mxu0 %v2715_v4 }
  0x20   :  { %2424 = vmatprep.subr.bf16.mxu0 %v2642_v11  ;;  %2232 = vmatpush3.bf16.msra.mxu1 %v2715_v4 }
  0x21   :  { %2430 = vmatprep.subr.bf16.mxu1 %v2642_v11 }
  0x22   :  { %2222 = vmatmul.mubr.msk.bf16.vlgmr.msra.gmra.mrb[4].mxu0 %vm77_vm0, %v2540_v9 }
  0x23   :  { %2426 = vmatpush3.bf16.msra.mxu0 %v2750_v10  ;;  %2245 = vmatprep.mubr.msk.f32.mxu0 %vm2643_vm1, %v2644_v15 }
  0x24   :  { %2427 = vmatprep.subr.bf16.mxu0 %v2642_v11  ;;  %2234 = vmatmul.mubr.msk.bf16.vlgmr.msra.gmra.mrb[4].mxu1 %vm77_vm0, %v2544_v53 }
  0x25   :  { %2432 = vmatpush3.bf16.msra.mxu1 %v2750_v10  ;;  %2256 = vmatprep.mubr.msk.f32.mxu1 %vm2643_vm1, %v2644_v15 }
  0x26   :  { %2433 = vmatprep.subr.bf16.mxu1 %v2642_v11 }
  0x27   :  { %2429 = vmatpush3.bf16.msra.mxu0 %v2761_v14 }
  0x28   :  { %2436 = vmatprep.subr.bf16.mxu0 %v2642_v11 }
  0x29   :  { %2435 = vmatpush3.bf16.msra.mxu1 %v2761_v14 }
  0x2a   :  { %2246 = vmatmul.mubr.f32.vlgmr.msra.gmra.mrb[8].mxu0 %v2644_v15  ;;  %2442 = vmatprep.subr.bf16.mxu1 %v2642_v11 }
  0x2b   :  { %2438 = vmatpush3.bf16.msra.mxu0 %v2750_v10  ;;  %2267 = vmatprep.mubr.msk.f32.mxu0 %vm2643_vm1, %v2644_v15 }
  0x2c   :  { %2439 = vmatprep.subr.bf16.mxu0 %v2642_v11 }
  0x2f   :  { %2441 = vmatpush3.bf16.msra.mxu0 %v2761_v14 }
  0x30   :  { %2448 = vmatprep.subr.bf16.mxu0 %v2642_v11 }
  0xe5   :  { %v2775_v16 = vpop.f32.mrb[0].mxu0  ;;  %v2849_v56 = vpop.f32.mrb[0].mxu1 }
  0xe6   :  { %v118_v17 = vpop.f32.mrb[1].mxu0  ;;  %v2851_v57 = vpop.f32.mrb[1].mxu1 }
  0xe7   :  { %v2777_v18 = vpop.f32.mrb[2].mxu0  ;;  %v119_v28 = vadd.f32 %v2792_v26, %v118_v17  ;;  %v2853_v58 = vpop.f32.mrb[2].mxu1 }
  0xe8   :  { %v2779_v19 = vpop.f32.mrb[3].mxu0  ;;  %v2855_v59 = vpop.f32.mrb[3].mxu1 }
  0xe9   :  { %v122_v1 = vadd.f32 %v2792_v26, %v2779_v19 }
  0xf5   :  { %v2781_v22 = vpop.f32.mrb[4].mxu0 }
  0xf6   :  { %v2783_v23 = vpop.f32.mrb[5].mxu0 }
  0xf7   :  { %v2785_v24 = vpop.f32.mrb[6].mxu0  ;;  %v2857_v60 = vpop.f32.mrb[4].mxu1 }
  0xf8   :  { %v2787_v25 = vpop.f32.mrb[7].mxu0  ;;  %v2859_v61 = vpop.f32.mrb[5].mxu1 }
  0xf9   :  { %v2861_v62 = vpop.f32.mrb[6].mxu1 }
  0xfa   :  { %v2863_v63 = vpop.f32.mrb[7].mxu1 }
  0xfd   :  { %v422_v31 = vpop.f32.mrb[8].mxu0 }
  0xfe   :  { %v426_v32 = vadd.f32 %v422_v31, %v119_v28  ;;  %v2247_v33 = vpop.f32.mrb[9].mxu0 }
  0xff   :  { %v127_v33 = vadd.f32 %v2775_v16, %v2792_v26 }
 0x100   :  { %v427_v34 = vmul.f32 %v426_v32, %v2801_v30 }
 0x102   :  { %v428_v35 = vmul.f32 1.442695, %v427_v34 }
 0x104   :  { %2545 = vpow2.f32 %v428_v35 }
 0x10e   :  { %v2546_v36 = vpop.eup %2545 }
 0x10f   :  { %v430_v37 = vadd.f32 1.0, %v2546_v36 }
 0x111   :  { %2547 = vrcp.f32 %v430_v37 }
 0x11b   :  { %v2548_v40 = vpop.eup %2547 }
 0x11c   :  { %v432_v42 = vmul.f32 %v2548_v40, %v2806_v39 }
 0x11e   :  { %v433_v43 = vadd.f32 %v432_v42, %v2811_v41 }
 0x120   :  { %436 = vrot.lane.b32.xlu0 %v433_v43, %s2647_s21  ;;  %v434_v46 = vmul.f32 0.0, %v433_v43 }
 0x192   :  { %v437_v44 = vpop.permute.xlu0 %436 }
 0x193   :  { %v439_v45 = vmul.f32 %v437_v44, %v433_v43 }
 0x195   :  { %441 = vrot.lane.b32.xlu0 %v439_v45, %s2648_s22 }
 0x207   :  { %v442_v47 = vpop.permute.xlu0 %441 }
 0x208   :  { %v444_v48 = vadd.f32 %v442_v47, %v434_v46 }
 0x20a   :  { %2549 = vtanh.f32 %v444_v48 }
 0x214   :  { %v2550_v52 = vpop.eup %2549 }
 0x215   :  { %447 = vrot.lane.b32.xlu1 %v2550_v52, %s2647_s21 }
 0x287   :  { %v448_v54 = vpop.permute.xlu1 %447 }
 0x288   :  { %v450_v55 = vmul.f32 %v448_v54, %v433_v43  ;;  %v130_v54 = vadd.f32 %v2777_v18, %v2792_v26 }
 0x28a   :  { %452 = vrot.lane.b32.xlu1 %v450_v55, %s2648_s22 }
 0x2fc   :  { %v453_v0 = vpop.permute.xlu1 %452 }
 0x2fd   :  { %2257 = vmatmul.mubr.msk.f32.vlgmr.msra.gmra.mrb[8].mxu1 %vm352_vm5, %v453_v0 }
 0x2fe   :  { %2444 = vmatpush3.bf16.msra.mxu1 %v2750_v10  ;;  %2278 = vmatprep.mubr.msk.f32.mxu1 %vm2643_vm1, %v2644_v15 }
 0x2ff   :  { %2445 = vmatprep.subr.bf16.mxu1 %v2642_v11 }
 0x302   :  { %2447 = vmatpush3.bf16.msra.mxu1 %v2761_v14 }
 0x303   :  { %2454 = vmatprep.subr.bf16.mxu1 %v2642_v11 }
 0x3d0   :  { %v522_v2 = vpop.f32.mrb[8].mxu1 }
 0x3d1   :  { %v526_v3 = vadd.f32 %v522_v2, %v122_v1  ;;  %v2258_v4 = vpop.f32.mrb[9].mxu1 }
 0x3d3   :  { %v527_v5 = vmul.f32 %v526_v3, %v2801_v30 }
 0x3d5   :  { %v528_v6 = vmul.f32 1.442695, %v527_v5 }
 0x3d7   :  { %2551 = vpow2.f32 %v528_v6 }
 0x3e1   :  { %v2552_v7 = vpop.eup %2551 }
 0x3e2   :  { %v530_v8 = vadd.f32 1.0, %v2552_v7 }
 0x3e4   :  { %2553 = vrcp.f32 %v530_v8 }
 0x3ee   :  { %v2554_v9 = vpop.eup %2553 }
 0x3ef   :  { %v532_v12 = vmul.f32 %v2554_v9, %v2806_v39 }
 0x3f1   :  { %v533_v13 = vadd.f32 %v532_v12, %v2811_v41 }
 0x3f3   :  { %536 = vrot.lane.b32.xlu0 %v533_v13, %s2647_s21  ;;  %v534_v19 = vmul.f32 %v533_v13, %v444_v48 }
 0x465   :  { %v537_v17 = vpop.permute.xlu0 %536 }
 0x466   :  { %v539_v20 = vmul.f32 %v537_v17, %v533_v13 }
 0x468   :  { %541 = vrot.lane.b32.xlu1 %v539_v20, %s2648_s22 }
 0x4da   :  { %v542_v21 = vpop.permute.xlu1 %541 }
 0x4db   :  { %v544_v27 = vadd.f32 %v542_v21, %v534_v19 }
 0x4dd   :  { %2555 = vtanh.f32 %v544_v27 }
 0x4e7   :  { %v2556_v28 = vpop.eup %2555 }
 0x4e8   :  { %547 = vrot.lane.b32.xlu0 %v2556_v28, %s2647_s21  ;;  %v188_v28 = vadd.f32 %v2792_v26, %v2851_v57 }
 0x55a   :  { %v548_v29 = vpop.permute.xlu0 %547 }
 0x55b   :  { %v550_v31 = vmul.f32 %v548_v29, %v533_v13 }
 0x55d   :  { %552 = vrot.lane.b32.xlu1 %v550_v31, %s2648_s22 }
 0x5cf   :  { %v553_v32 = vpop.permute.xlu1 %552 }
 0x5d0   :  { %2268 = vmatmul.mubr.msk.f32.vlgmr.msra.gmra.mrb[10].mxu0 %vm352_vm5, %v553_v32 }
 0x5d1   :  { %2450 = vmatpush3.bf16.msra.mxu0 %v2750_v10  ;;  %2289 = vmatprep.mubr.msk.f32.mxu0 %vm2643_vm1, %v2644_v15 }
 0x5d2   :  { %2451 = vmatprep.subr.bf16.mxu0 %v2642_v11 }
 0x5d5   :  { %2453 = vmatpush3.bf16.msra.mxu0 %v2761_v14 }
 0x5d6   :  { %2460 = vmatprep.subr.bf16.mxu0 %v2642_v11 }
 0x6a3   :  { %v622_v34 = vpop.f32.mrb[10].mxu0 }
 0x6a4   :  { %v626_v35 = vadd.f32 %v622_v34, %v127_v33  ;;  %v2269_v36 = vpop.f32.mrb[11].mxu0 }
 0x6a6   :  { %v627_v37 = vmul.f32 %v626_v35, %v2801_v30 }
 0x6a8   :  { %v628_v38 = vmul.f32 1.442695, %v627_v37 }
 0x6aa   :  { %2557 = vpow2.f32 %v628_v38 }
 0x6b4   :  { %v2558_v40 = vpop.eup %2557 }
 0x6b5   :  { %v630_v42 = vadd.f32 1.0, %v2558_v40 }
 0x6b7   :  { %2559 = vrcp.f32 %v630_v42 }
 0x6c1   :  { %v2560_v43 = vpop.eup %2559 }
 0x6c2   :  { %v632_v44 = vmul.f32 %v2560_v43, %v2806_v39 }
 0x6c4   :  { %v633_v45 = vadd.f32 %v632_v44, %v2811_v41 }
 0x6c6   :  { %636 = vrot.lane.b32.xlu0 %v633_v45, %s2647_s21  ;;  %v634_v16 = vmul.f32 %v633_v45, %v544_v27 }
 0x738   :  { %v637_v46 = vpop.permute.xlu0 %636 }
 0x739   :  { %v639_v47 = vmul.f32 %v637_v46, %v633_v45 }
 0x73b   :  { %641 = vrot.lane.b32.xlu1 %v639_v47, %s2648_s22 }
 0x7ad   :  { %v642_v48 = vpop.permute.xlu1 %641 }
 0x7ae   :  { %v644_v49 = vadd.f32 %v642_v48, %v634_v16 }
 0x7b0   :  { %2561 = vtanh.f32 %v644_v49 }
 0x7ba   :  { %v2562_v50 = vpop.eup %2561 }
 0x7bb   :  { %647 = vrot.lane.b32.xlu0 %v2562_v50, %s2647_s21 }
 0x82d   :  { %v648_v51 = vpop.permute.xlu0 %647 }
 0x82e   :  { %v650_v52 = vmul.f32 %v648_v51, %v633_v45 }
 0x830   :  { %652 = vrot.lane.b32.xlu1 %v650_v52, %s2648_s22 }
 0x8a2   :  { %v653_v53 = vpop.permute.xlu1 %652 }
 0x8a3   :  { %2279 = vmatmul.mubr.msk.f32.vlgmr.msra.gmra.mrb[10].mxu1 %vm352_vm5, %v653_v53 }
 0x8a4   :  { %2456 = vmatpush3.bf16.msra.mxu1 %v2750_v10  ;;  %2300 = vmatprep.mubr.msk.f32.mxu1 %vm2643_vm1, %v2644_v15 }
 0x8a5   :  { %2457 = vmatprep.subr.bf16.mxu1 %v2642_v11 }
 0x8a8   :  { %2459 = vmatpush3.bf16.msra.mxu1 %v2761_v14 }
 0x8a9   :  { %2466 = vmatprep.subr.bf16.mxu1 %v2642_v11 }
 0x976   :  { %v722_v55 = vpop.f32.mrb[10].mxu1 }
 0x977   :  { %v726_v0 = vadd.f32 %v722_v55, %v130_v54  ;;  %v2280_v1 = vpop.f32.mrb[11].mxu1 }
 0x979   :  { %v727_v2 = vmul.f32 %v726_v0, %v2801_v30 }
 0x97b   :  { %v728_v3 = vmul.f32 1.442695, %v727_v2 }
 0x97d   :  { %2563 = vpow2.f32 %v728_v3 }
 0x987   :  { %v2564_v4 = vpop.eup %2563 }
 0x988   :  { %v730_v5 = vadd.f32 1.0, %v2564_v4 }
 0x98a   :  { %2565 = vrcp.f32 %v730_v5 }
 0x994   :  { %v2566_v6 = vpop.eup %2565 }
 0x995   :  { %v732_v7 = vmul.f32 %v2566_v6, %v2806_v39 }
 0x997   :  { %v733_v8 = vadd.f32 %v732_v7, %v2811_v41 }
 0x999   :  { %736 = vrot.lane.b32.xlu0 %v733_v8, %s2647_s21  ;;  %v734_v18 = vmul.f32 %v733_v8, %v644_v49  ;;  %v191_v49 = vadd.f32 %v2792_v26, %v2855_v59 }
 0xa0b   :  { %v737_v9 = vpop.permute.xlu0 %736 }
 0xa0c   :  { %v739_v12 = vmul.f32 %v737_v9, %v733_v8 }
 0xa0e   :  { %741 = vrot.lane.b32.xlu1 %v739_v12, %s2648_s22 }
 0xa80   :  { %v742_v13 = vpop.permute.xlu1 %741 }
 0xa81   :  { %v744_v17 = vadd.f32 %v742_v13, %v734_v18  ;;  %v196_v13 = vadd.f32 %v2849_v56, %v2792_v26 }
 0xa83   :  { %2567 = vtanh.f32 %v744_v17 }
 0xa8d   :  { %v2568_v20 = vpop.eup %2567 }
 0xa8e   :  { %747 = vrot.lane.b32.xlu0 %v2568_v20, %s2647_s21 }
 0xb00   :  { %v748_v19 = vpop.permute.xlu0 %747 }
 0xb01   :  { %v750_v21 = vmul.f32 %v748_v19, %v733_v8 }
 0xb03   :  { %752 = vrot.lane.b32.xlu1 %v750_v21, %s2648_s22 }
 0xb75   :  { %v753_v27 = vpop.permute.xlu1 %752 }
 0xb76   :  { %2290 = vmatmul.mubr.msk.f32.vlgmr.msra.gmra.mrb[12].mxu0 %vm352_vm5, %v753_v27 }
 0xb77   :  { %2462 = vmatpush3.bf16.msra.mxu0 %v2750_v10  ;;  %2311 = vmatprep.mubr.msk.f32.mxu0 %vm2643_vm1, %v2644_v15 }
 0xb78   :  { %2463 = vmatprep.subr.bf16.mxu0 %v2642_v11 }
 0xb7b   :  { %2465 = vmatpush3.bf16.msra.mxu0 %v2761_v14 }
 0xb7c   :  { %2472 = vmatprep.subr.bf16.mxu0 %v2642_v11 }
 0xc49   :  { %v822_v29 = vpop.f32.mrb[12].mxu0 }
 0xc4a   :  { %v826_v31 = vadd.f32 %v822_v29, %v188_v28  ;;  %v2291_v32 = vpop.f32.mrb[13].mxu0 }
 0xc4c   :  { %v827_v33 = vmul.f32 %v826_v31, %v2801_v30 }
 0xc4e   :  { %v828_v34 = vmul.f32 1.442695, %v827_v33 }
 0xc50   :  { %2569 = vpow2.f32 %v828_v34 }
 0xc5a   :  { %v2570_v35 = vpop.eup %2569 }
 0xc5b   :  { %v830_v36 = vadd.f32 1.0, %v2570_v35 }
 0xc5d   :  { %2571 = vrcp.f32 %v830_v36 }
 0xc67   :  { %v2572_v37 = vpop.eup %2571 }
 0xc68   :  { %v832_v38 = vmul.f32 %v2572_v37, %v2806_v39 }
 0xc6a   :  { %v833_v40 = vadd.f32 %v832_v38, %v2811_v41 }
 0xc6c   :  { %836 = vrot.lane.b32.xlu0 %v833_v40, %s2647_s21  ;;  %v834_v57 = vmul.f32 %v833_v40, %v744_v17 }
 0xcde   :  { %v837_v42 = vpop.permute.xlu0 %836 }
 0xcdf   :  { %v839_v43 = vmul.f32 %v837_v42, %v833_v40 }
 0xce1   :  { %841 = vrot.lane.b32.xlu1 %v839_v43, %s2648_s22 }
 0xd53   :  { %v842_v44 = vpop.permute.xlu1 %841 }
 0xd54   :  { %v844_v45 = vadd.f32 %v842_v44, %v834_v57  ;;  %v199_v57 = vadd.f32 %v2853_v58, %v2792_v26 }
 0xd56   :  { %2573 = vtanh.f32 %v844_v45 }
 0xd60   :  { %v2574_v46 = vpop.eup %2573 }
 0xd61   :  { %847 = vrot.lane.b32.xlu0 %v2574_v46, %s2647_s21 }
 0xdd3   :  { %v848_v47 = vpop.permute.xlu0 %847 }
 0xdd4   :  { %v850_v16 = vmul.f32 %v848_v47, %v833_v40 }
 0xdd6   :  { %852 = vrot.lane.b32.xlu1 %v850_v16, %s2648_s22 }
 0xe48   :  { %v853_v48 = vpop.permute.xlu1 %852 }
 0xe49   :  { %2301 = vmatmul.mubr.msk.f32.vlgmr.msra.gmra.mrb[12].mxu1 %vm352_vm5, %v853_v48 }
 0xe4a   :  { %2468 = vmatpush3.bf16.msra.mxu1 %v2750_v10  ;;  %2322 = vmatprep.mubr.msk.f32.mxu1 %vm2643_vm1, %v2644_v15 }
 0xe4b   :  { %2469 = vmatprep.subr.bf16.mxu1 %v2642_v11 }
 0xe4e   :  { %2471 = vmatpush3.bf16.msra.mxu1 %v2761_v14 }
 0xe4f   :  { %2478 = vmatprep.subr.bf16.mxu1 %v2642_v11 }
 0xf1c   :  { %v922_v50 = vpop.f32.mrb[12].mxu1 }
 0xf1d   :  { %v926_v51 = vadd.f32 %v922_v50, %v191_v49  ;;  %v2302_v52 = vpop.f32.mrb[13].mxu1 }
 0xf1f   :  { %v927_v53 = vmul.f32 %v926_v51, %v2801_v30 }
 0xf21   :  { %v928_v54 = vmul.f32 1.442695, %v927_v53 }
 0xf23   :  { %2575 = vpow2.f32 %v928_v54 }
 0xf2d   :  { %v2576_v55 = vpop.eup %2575 }
 0xf2e   :  { %v930_v0 = vadd.f32 1.0, %v2576_v55 }
 0xf30   :  { %2577 = vrcp.f32 %v930_v0 }
 0xf3a   :  { %v2578_v1 = vpop.eup %2577 }
 0xf3b   :  { %v932_v2 = vmul.f32 %v2578_v1, %v2806_v39 }
 0xf3d   :  { %v933_v3 = vadd.f32 %v932_v2, %v2811_v41 }
 0xf3f   :  { %936 = vrot.lane.b32.xlu0 %v933_v3, %s2647_s21  ;;  %v934_v59 = vmul.f32 %v933_v3, %v844_v45 }
 0xfb1   :  { %v937_v4 = vpop.permute.xlu0 %936 }
 0xfb2   :  { %v939_v5 = vmul.f32 %v937_v4, %v933_v3 }
 0xfb4   :  { %941 = vrot.lane.b32.xlu1 %v939_v5, %s2648_s22  ;;  %v257_v5 = vadd.f32 %v2792_v26, %v2783_v23 }
0x1026   :  { %v942_v6 = vpop.permute.xlu1 %941 }
0x1027   :  { %v944_v7 = vadd.f32 %v942_v6, %v934_v59 }
0x1029   :  { %2579 = vtanh.f32 %v944_v7 }
0x1033   :  { %v2580_v8 = vpop.eup %2579 }
0x1034   :  { %947 = vrot.lane.b32.xlu0 %v2580_v8, %s2647_s21 }
0x10a6   :  { %v948_v9 = vpop.permute.xlu0 %947 }
0x10a7   :  { %v950_v12 = vmul.f32 %v948_v9, %v933_v3 }
0x10a9   :  { %952 = vrot.lane.b32.xlu1 %v950_v12, %s2648_s22 }
0x111b   :  { %v953_v18 = vpop.permute.xlu1 %952 }
0x111c   :  { %2312 = vmatmul.mubr.msk.f32.vlgmr.msra.gmra.mrb[14].mxu0 %vm352_vm5, %v953_v18 }
0x111d   :  { %2474 = vmatpush3.bf16.msra.mxu0 %v2750_v10  ;;  %2333 = vmatprep.mubr.msk.f32.mxu0 %vm2643_vm1, %v2644_v15 }
0x111e   :  { %2475 = vmatprep.subr.bf16.mxu0 %v2642_v11 }
0x1121   :  { %2477 = vmatpush3.bf16.msra.mxu0 %v2761_v14 }
0x1122   :  { %2484 = vmatprep.subr.bf16.mxu0 %v2642_v11 }
0x11ef   :  { %v1022_v17 = vpop.f32.mrb[14].mxu0 }
0x11f0   :  { %v1026_v20 = vadd.f32 %v1022_v17, %v196_v13  ;;  %v2313_v19 = vpop.f32.mrb[15].mxu0 }
0x11f2   :  { %v1027_v21 = vmul.f32 %v1026_v20, %v2801_v30 }
0x11f4   :  { %v1028_v27 = vmul.f32 1.442695, %v1027_v21 }
0x11f6   :  { %2581 = vpow2.f32 %v1028_v27 }
0x1200   :  { %v2582_v28 = vpop.eup %2581 }
0x1201   :  { %v1030_v29 = vadd.f32 1.0, %v2582_v28 }
0x1203   :  { %2583 = vrcp.f32 %v1030_v29 }
0x120d   :  { %v2584_v31 = vpop.eup %2583 }
0x120e   :  { %v1032_v32 = vmul.f32 %v2584_v31, %v2806_v39 }
0x1210   :  { %v1033_v33 = vadd.f32 %v1032_v32, %v2811_v41 }
0x1212   :  { %1036 = vrot.lane.b32.xlu0 %v1033_v33, %s2647_s21  ;;  %v1034_v56 = vmul.f32 %v1033_v33, %v944_v7 }
0x1284   :  { %v1037_v34 = vpop.permute.xlu0 %1036 }
0x1285   :  { %v1039_v35 = vmul.f32 %v1037_v34, %v1033_v33  ;;  %v260_v34 = vadd.f32 %v2792_v26, %v2787_v25 }
0x1287   :  { %1041 = vrot.lane.b32.xlu1 %v1039_v35, %s2648_s22 }
0x12f9   :  { %v1042_v36 = vpop.permute.xlu1 %1041 }
0x12fa   :  { %v1044_v37 = vadd.f32 %v1042_v36, %v1034_v56 }
0x12fc   :  { %2585 = vtanh.f32 %v1044_v37 }
0x1306   :  { %v2586_v38 = vpop.eup %2585 }
0x1307   :  { %1047 = vrot.lane.b32.xlu0 %v2586_v38, %s2647_s21 }
0x1379   :  { %v1048_v40 = vpop.permute.xlu0 %1047 }
0x137a   :  { %v1050_v42 = vmul.f32 %v1048_v40, %v1033_v33 }
0x137c   :  { %1052 = vrot.lane.b32.xlu1 %v1050_v42, %s2648_s22 }
0x13ee   :  { %v1053_v43 = vpop.permute.xlu1 %1052 }
0x13ef   :  { %2323 = vmatmul.mubr.msk.f32.vlgmr.msra.gmra.mrb[14].mxu1 %vm352_vm5, %v1053_v43 }
0x13f0   :  { %2480 = vmatpush3.bf16.msra.mxu1 %v2750_v10  ;;  %2344 = vmatprep.mubr.msk.f32.mxu1 %vm2643_vm1, %v2644_v15 }
0x13f1   :  { %2481 = vmatprep.subr.bf16.mxu1 %v2642_v11 }
0x13f4   :  { %2483 = vmatpush3.bf16.msra.mxu1 %v2761_v14 }
0x13f5   :  { %2490 = vmatprep.subr.bf16.mxu1 %v2642_v11 }
0x14c2   :  { %v1122_v44 = vpop.f32.mrb[14].mxu1 }
0x14c3   :  { %v1126_v45 = vadd.f32 %v1122_v44, %v199_v57  ;;  %v2324_v46 = vpop.f32.mrb[15].mxu1 }
0x14c5   :  { %v1127_v47 = vmul.f32 %v1126_v45, %v2801_v30 }
0x14c7   :  { %v1128_v16 = vmul.f32 1.442695, %v1127_v47 }
0x14c9   :  { %2587 = vpow2.f32 %v1128_v16 }
0x14d3   :  { %v2588_v48 = vpop.eup %2587 }
0x14d4   :  { %v1130_v49 = vadd.f32 1.0, %v2588_v48 }
0x14d6   :  { %2589 = vrcp.f32 %v1130_v49 }
0x14e0   :  { %v2590_v50 = vpop.eup %2589 }
0x14e1   :  { %v1132_v51 = vmul.f32 %v2590_v50, %v2806_v39 }
0x14e3   :  { %v1133_v52 = vadd.f32 %v1132_v51, %v2811_v41 }
0x14e5   :  { %1136 = vrot.lane.b32.xlu0 %v1133_v52, %s2647_s21  ;;  %v1134_v58 = vmul.f32 %v1133_v52, %v1044_v37 }
0x1557   :  { %v1137_v53 = vpop.permute.xlu0 %1136 }
0x1558   :  { %v1139_v54 = vmul.f32 %v1137_v53, %v1133_v52 }
0x155a   :  { %1141 = vrot.lane.b32.xlu1 %v1139_v54, %s2648_s22 }
0x15cc   :  { %v1142_v55 = vpop.permute.xlu1 %1141 }
0x15cd   :  { %v1144_v0 = vadd.f32 %v1142_v55, %v1134_v58 }
0x15cf   :  { %2591 = vtanh.f32 %v1144_v0 }
0x15d9   :  { %v2592_v1 = vpop.eup %2591 }
0x15da   :  { %1147 = vrot.lane.b32.xlu0 %v2592_v1, %s2647_s21 }
0x164c   :  { %v1148_v2 = vpop.permute.xlu0 %1147 }
0x164d   :  { %v1150_v3 = vmul.f32 %v1148_v2, %v1133_v52  ;;  %v265_v52 = vadd.f32 %v2781_v22, %v2792_v26 }
0x164f   :  { %1152 = vrot.lane.b32.xlu1 %v1150_v3, %s2648_s22 }
0x16c1   :  { %v1153_v4 = vpop.permute.xlu1 %1152 }
0x16c2   :  { %2334 = vmatmul.mubr.msk.f32.vlgmr.msra.gmra.mrb[16].mxu0 %vm352_vm5, %v1153_v4 }
0x16c3   :  { %2486 = vmatpush3.bf16.msra.mxu0 %v2750_v10  ;;  %2355 = vmatprep.mubr.msk.f32.mxu0 %vm2643_vm1, %v2644_v15 }
0x16c4   :  { %2487 = vmatprep.subr.bf16.mxu0 %v2642_v11 }
0x16c7   :  { %2489 = vmatpush3.bf16.msra.mxu0 %v2761_v14 }
0x16c8   :  { %2496 = vmatprep.subr.bf16.mxu0 %v2642_v11 }
0x1795   :  { %v1222_v59 = vpop.f32.mrb[16].mxu0 }
0x1796   :  { %v1226_v6 = vadd.f32 %v1222_v59, %v257_v5  ;;  %v2335_v7 = vpop.f32.mrb[17].mxu0 }
0x1798   :  { %v1227_v8 = vmul.f32 %v1226_v6, %v2801_v30 }
0x179a   :  { %v1228_v9 = vmul.f32 1.442695, %v1227_v8 }
0x179c   :  { %2593 = vpow2.f32 %v1228_v9 }
0x17a6   :  { %v2594_v12 = vpop.eup %2593 }
0x17a7   :  { %v1230_v18 = vadd.f32 1.0, %v2594_v12 }
0x17a9   :  { %2595 = vrcp.f32 %v1230_v18 }
0x17b3   :  { %v2596_v13 = vpop.eup %2595 }
0x17b4   :  { %v1232_v17 = vmul.f32 %v2596_v13, %v2806_v39 }
0x17b6   :  { %v1233_v20 = vadd.f32 %v1232_v17, %v2811_v41  ;;  %v268_v17 = vadd.f32 %v2785_v24, %v2792_v26 }
0x17b8   :  { %1236 = vrot.lane.b32.xlu0 %v1233_v20, %s2647_s21  ;;  %v1234_v23 = vmul.f32 %v1233_v20, %v1144_v0 }
0x182a   :  { %v1237_v19 = vpop.permute.xlu0 %1236 }
0x182b   :  { %v1239_v21 = vmul.f32 %v1237_v19, %v1233_v20 }
0x182d   :  { %1241 = vrot.lane.b32.xlu1 %v1239_v21, %s2648_s22 }
0x189f   :  { %v1242_v27 = vpop.permute.xlu1 %1241 }
0x18a0   :  { %v1244_v28 = vadd.f32 %v1242_v27, %v1234_v23 }
0x18a2   :  { %2597 = vtanh.f32 %v1244_v28 }
0x18ac   :  { %v2598_v29 = vpop.eup %2597 }
0x18ad   :  { %1247 = vrot.lane.b32.xlu0 %v2598_v29, %s2647_s21 }
0x191f   :  { %v1248_v31 = vpop.permute.xlu0 %1247 }
0x1920   :  { %v1250_v32 = vmul.f32 %v1248_v31, %v1233_v20 }
0x1922   :  { %1252 = vrot.lane.b32.xlu1 %v1250_v32, %s2648_s22 }
0x1994   :  { %v1253_v33 = vpop.permute.xlu1 %1252 }
0x1995   :  { %2345 = vmatmul.mubr.msk.f32.vlgmr.msra.gmra.mrb[16].mxu1 %vm352_vm5, %v1253_v33 }
0x1996   :  { %2492 = vmatpush3.bf16.msra.mxu1 %v2750_v10  ;;  %2366 = vmatprep.mubr.msk.f32.mxu1 %vm2643_vm1, %v2644_v15 }
0x1997   :  { %2493 = vmatprep.subr.bf16.mxu1 %v2642_v11 }
0x199a   :  { %2495 = vmatpush3.bf16.msra.mxu1 %v2761_v14 }
0x199b   :  { %2502 = vmatprep.subr.bf16.mxu1 %v2642_v11 }
0x1a68   :  { %v1322_v35 = vpop.f32.mrb[16].mxu1 }
0x1a69   :  { %v1326_v56 = vadd.f32 %v1322_v35, %v260_v34  ;;  %v2346_v36 = vpop.f32.mrb[17].mxu1 }
0x1a6b   :  { %v1327_v37 = vmul.f32 %v1326_v56, %v2801_v30 }
0x1a6d   :  { %v1328_v38 = vmul.f32 1.442695, %v1327_v37 }
0x1a6f   :  { %2599 = vpow2.f32 %v1328_v38 }
0x1a79   :  { %v2600_v40 = vpop.eup %2599 }
0x1a7a   :  { %v1330_v42 = vadd.f32 1.0, %v2600_v40 }
0x1a7c   :  { %2601 = vrcp.f32 %v1330_v42 }
0x1a86   :  { %v2602_v43 = vpop.eup %2601 }
0x1a87   :  { %v1332_v57 = vmul.f32 %v2602_v43, %v2806_v39  ;;  %v326_v43 = vadd.f32 %v2792_v26, %v2859_v61 }
0x1a89   :  { %v1333_v44 = vadd.f32 %v1332_v57, %v2811_v41 }
0x1a8b   :  { %1336 = vrot.lane.b32.xlu0 %v1333_v44, %s2647_s21  ;;  %v1334_v25 = vmul.f32 %v1333_v44, %v1244_v28 }
0x1afd   :  { %v1337_v45 = vpop.permute.xlu0 %1336 }
0x1afe   :  { %v1339_v46 = vmul.f32 %v1337_v45, %v1333_v44 }
0x1b00   :  { %1341 = vrot.lane.b32.xlu1 %v1339_v46, %s2648_s22 }
0x1b72   :  { %v1342_v47 = vpop.permute.xlu1 %1341 }
0x1b73   :  { %v1344_v16 = vadd.f32 %v1342_v47, %v1334_v25 }
0x1b75   :  { %2603 = vtanh.f32 %v1344_v16 }
0x1b7f   :  { %v2604_v48 = vpop.eup %2603 }
0x1b80   :  { %1347 = vrot.lane.b32.xlu0 %v2604_v48, %s2647_s21 }
0x1bf2   :  { %v1348_v49 = vpop.permute.xlu0 %1347 }
0x1bf3   :  { %v1350_v50 = vmul.f32 %v1348_v49, %v1333_v44 }
0x1bf5   :  { %1352 = vrot.lane.b32.xlu1 %v1350_v50, %s2648_s22 }
0x1c67   :  { %v1353_v51 = vpop.permute.xlu1 %1352 }
0x1c68   :  { %2356 = vmatmul.mubr.msk.f32.vlgmr.msra.gmra.mrb[18].mxu0 %vm352_vm5, %v1353_v51 }
0x1c69   :  { %2498 = vmatpush3.bf16.msra.mxu0 %v2750_v10  ;;  %2377 = vmatprep.mubr.msk.f32.mxu0 %vm2643_vm1, %v2644_v15 }
0x1c6a   :  { %2499 = vmatprep.subr.bf16.mxu0 %v2642_v11 }
0x1c6d   :  { %2501 = vmatpush3.bf16.msra.mxu0 %v2761_v14 }
0x1c6e   :  { %2508 = vmatprep.subr.bf16.mxu0 %v2642_v11 }
0x1d3b   :  { %v1422_v53 = vpop.f32.mrb[18].mxu0 }
0x1d3c   :  { %v1426_v54 = vadd.f32 %v1422_v53, %v265_v52  ;;  %v2357_v58 = vpop.f32.mrb[19].mxu0 }
0x1d3e   :  { %v1427_v55 = vmul.f32 %v1426_v54, %v2801_v30 }
0x1d40   :  { %v1428_v0 = vmul.f32 1.442695, %v1427_v55 }
0x1d42   :  { %2605 = vpow2.f32 %v1428_v0 }
0x1d4c   :  { %v2606_v1 = vpop.eup %2605 }
0x1d4d   :  { %v1430_v2 = vadd.f32 1.0, %v2606_v1 }
0x1d4f   :  { %2607 = vrcp.f32 %v1430_v2  ;;  %v329_v2 = vadd.f32 %v2792_v26, %v2863_v63 }
0x1d59   :  { %v2608_v3 = vpop.eup %2607 }
0x1d5a   :  { %v1432_v4 = vmul.f32 %v2608_v3, %v2806_v39 }
0x1d5c   :  { %v1433_v5 = vadd.f32 %v1432_v4, %v2811_v41 }
0x1d5e   :  { %1436 = vrot.lane.b32.xlu0 %v1433_v5, %s2647_s21  ;;  %v1434_v22 = vmul.f32 %v1433_v5, %v1344_v16 }
0x1dd0   :  { %v1437_v59 = vpop.permute.xlu0 %1436 }
0x1dd1   :  { %v1439_v6 = vmul.f32 %v1437_v59, %v1433_v5 }
0x1dd3   :  { %1441 = vrot.lane.b32.xlu1 %v1439_v6, %s2648_s22 }
0x1e45   :  { %v1442_v7 = vpop.permute.xlu1 %1441 }
0x1e46   :  { %v1444_v8 = vadd.f32 %v1442_v7, %v1434_v22 }
0x1e48   :  { %2609 = vtanh.f32 %v1444_v8 }
0x1e52   :  { %v2610_v9 = vpop.eup %2609 }
0x1e53   :  { %1447 = vrot.lane.b32.xlu0 %v2610_v9, %s2647_s21 }
0x1ec5   :  { %v1448_v12 = vpop.permute.xlu0 %1447 }
0x1ec6   :  { %v1450_v18 = vmul.f32 %v1448_v12, %v1433_v5 }
0x1ec8   :  { %1452 = vrot.lane.b32.xlu1 %v1450_v18, %s2648_s22 }
0x1f3a   :  { %v1453_v13 = vpop.permute.xlu1 %1452 }
0x1f3b   :  { %2367 = vmatmul.mubr.msk.f32.vlgmr.msra.gmra.mrb[18].mxu1 %vm352_vm5, %v1453_v13 }
0x1f3c   :  { %2504 = vmatpush3.bf16.msra.mxu1 %v2750_v10  ;;  %2388 = vmatprep.mubr.msk.f32.mxu1 %vm2643_vm1, %v2644_v15 }
0x1f3d   :  { %2505 = vmatprep.subr.bf16.mxu1 %v2642_v11 }
0x1f40   :  { %2507 = vmatpush3.bf16.msra.mxu1 %v2761_v14 }
0x1f41   :  { %2514 = vmatprep.subr.bf16.mxu1 %v2642_v11 }
0x200e   :  { %v1522_v20 = vpop.f32.mrb[18].mxu1 }
0x200f   :  { %v1526_v19 = vadd.f32 %v1522_v20, %v268_v17  ;;  %v2368_v21 = vpop.f32.mrb[19].mxu1 }
0x2011   :  { %v1527_v23 = vmul.f32 %v1526_v19, %v2801_v30 }
0x2013   :  { %v1528_v27 = vmul.f32 1.442695, %v1527_v23  ;;  %v334_v23 = vadd.f32 %v2857_v60, %v2792_v26 }
0x2015   :  { %2611 = vpow2.f32 %v1528_v27 }
0x201f   :  { %v2612_v28 = vpop.eup %2611 }
0x2020   :  { %v1530_v29 = vadd.f32 1.0, %v2612_v28 }
0x2022   :  { %2613 = vrcp.f32 %v1530_v29 }
0x202c   :  { %v2614_v31 = vpop.eup %2613 }
0x202d   :  { %v1532_v32 = vmul.f32 %v2614_v31, %v2806_v39 }
0x202f   :  { %v1533_v33 = vadd.f32 %v1532_v32, %v2811_v41 }
0x2031   :  { %1536 = vrot.lane.b32.xlu0 %v1533_v33, %s2647_s21  ;;  %v1534_v24 = vmul.f32 %v1533_v33, %v1444_v8 }
0x20a3   :  { %v1537_v34 = vpop.permute.xlu0 %1536 }
0x20a4   :  { %v1539_v35 = vmul.f32 %v1537_v34, %v1533_v33 }
0x20a6   :  { %1541 = vrot.lane.b32.xlu1 %v1539_v35, %s2648_s22 }
0x2118   :  { %v1542_v56 = vpop.permute.xlu1 %1541 }
0x2119   :  { %v1544_v36 = vadd.f32 %v1542_v56, %v1534_v24 }
0x211b   :  { %2615 = vtanh.f32 %v1544_v36 }
0x2125   :  { %v2616_v37 = vpop.eup %2615 }
0x2126   :  { %1547 = vrot.lane.b32.xlu0 %v2616_v37, %s2647_s21 }
0x2198   :  { %v1548_v38 = vpop.permute.xlu0 %1547 }
0x2199   :  { %v1550_v40 = vmul.f32 %v1548_v38, %v1533_v33 }
0x219b   :  { %1552 = vrot.lane.b32.xlu1 %v1550_v40, %s2648_s22 }
0x220d   :  { %v1553_v42 = vpop.permute.xlu1 %1552 }
0x220e   :  { %2378 = vmatmul.mubr.msk.f32.vlgmr.msra.gmra.mrb[20].mxu0 %vm352_vm5, %v1553_v42 }
0x220f   :  { %2510 = vmatpush3.bf16.msra.mxu0 %v2750_v10  ;;  %2399 = vmatprep.mubr.msk.f32.mxu0 %vm2643_vm1, %v2644_v15 }
0x2210   :  { %2511 = vmatprep.subr.bf16.mxu0 %v2642_v11 }
0x2213   :  { %2513 = vmatpush3.bf16.msra.mxu0 %v2761_v14 }
0x2214   :  { %2520 = vmatprep.subr.bf16.mxu0 %v2642_v11 }
0x22e1   :  { %v1622_v57 = vpop.f32.mrb[20].mxu0 }
0x22e2   :  { %v1626_v44 = vadd.f32 %v1622_v57, %v326_v43  ;;  %v2379_v45 = vpop.f32.mrb[21].mxu0  ;;  %v2641_v57 = vld [vmem:[%s3119_s3] ss:$0 sm:$0xff] }
0x22e4   :  { %v1627_v46 = vmul.f32 %v1626_v44, %v2801_v30  ;;  %v337_v44 = vadd.f32 %v2641_v57, %v2861_v62 }
0x22e6   :  { %v1628_v25 = vmul.f32 1.442695, %v1627_v46 }
0x22e8   :  { %2617 = vpow2.f32 %v1628_v25 }
0x22f2   :  { %v2618_v47 = vpop.eup %2617 }
0x22f3   :  { %v1630_v16 = vadd.f32 1.0, %v2618_v47 }
0x22f5   :  { %2619 = vrcp.f32 %v1630_v16 }
0x22ff   :  { %v2620_v48 = vpop.eup %2619 }
0x2300   :  { %v1632_v49 = vmul.f32 %v2620_v48, %v2806_v39 }
0x2302   :  { %v1633_v50 = vadd.f32 %v1632_v49, %v2811_v41 }
0x2304   :  { %1636 = vrot.lane.b32.xlu0 %v1633_v50, %s2647_s21  ;;  %v1634_v61 = vmul.f32 %v1633_v50, %v1544_v36 }
0x2376   :  { %v1637_v51 = vpop.permute.xlu0 %1636 }
0x2377   :  { %v1639_v52 = vmul.f32 %v1637_v51, %v1633_v50 }
0x2379   :  { %1641 = vrot.lane.b32.xlu1 %v1639_v52, %s2648_s22 }
0x23eb   :  { %v1642_v53 = vpop.permute.xlu1 %1641 }
0x23ec   :  { %v1644_v54 = vadd.f32 %v1642_v53, %v1634_v61 }
0x23ee   :  { %2621 = vtanh.f32 %v1644_v54 }
0x23f8   :  { %v2622_v58 = vpop.eup %2621 }
0x23f9   :  { %1647 = vrot.lane.b32.xlu0 %v2622_v58, %s2647_s21 }
0x246b   :  { %v1648_v55 = vpop.permute.xlu0 %1647 }
0x246c   :  { %v1650_v0 = vmul.f32 %v1648_v55, %v1633_v50 }
0x246e   :  { %1652 = vrot.lane.b32.xlu1 %v1650_v0, %s2648_s22  ;;  %v1954_v0 = vld [vmem:[%s3120_s4 + $0x18] sm:$0xff] }
0x24e0   :  { %v1653_v1 = vpop.permute.xlu1 %1652 }
0x24e1   :  { %2389 = vmatmul.mubr.msk.f32.vlgmr.msra.gmra.mrb[20].mxu1 %vm352_vm5, %v1653_v1 }
0x24e2   :  { %2516 = vmatpush3.bf16.msra.mxu1 %v2750_v10  ;;  %2410 = vmatprep.mubr.msk.f32.mxu1 %vm2643_vm1, %v2644_v15 }
0x24e3   :  { %2517 = vmatprep.subr.bf16.mxu1 %v2642_v11 }
0x24e6   :  { %2519 = vmatpush3.bf16.msra.mxu1 %v2761_v14 }
0x25b4   :  { %v1722_v3 = vpop.f32.mrb[20].mxu1 }
0x25b5   :  { %v1726_v4 = vadd.f32 %v1722_v3, %v329_v2  ;;  %v2390_v5 = vpop.f32.mrb[21].mxu1 }
0x25b7   :  { %v1727_v59 = vmul.f32 %v1726_v4, %v2801_v30 }
0x25b9   :  { %v1728_v6 = vmul.f32 1.442695, %v1727_v59  ;;  %v2078_v59 = vld [vmem:[%s3121_s5] ss:$0 sm:$0xff] }
0x25bb   :  { %2623 = vpow2.f32 %v1728_v6 }
0x25c5   :  { %v2624_v22 = vpop.eup %2623 }
0x25c6   :  { %v1730_v7 = vadd.f32 1.0, %v2624_v22 }
0x25c8   :  { %2625 = vrcp.f32 %v1730_v7 }
0x25d2   :  { %v2626_v10 = vpop.eup %2625 }
0x25d3   :  { %v1732_v8 = vmul.f32 %v2626_v10, %v2806_v39 }
0x25d5   :  { %v1733_v9 = vadd.f32 %v1732_v8, %v2811_v41 }
0x25d7   :  { %1736 = vrot.lane.b32.xlu0 %v1733_v9, %s2647_s21  ;;  %v1734_v63 = vmul.f32 %v1733_v9, %v1644_v54 }
0x2649   :  { %v1737_v14 = vpop.permute.xlu0 %1736 }
0x264a   :  { %v1739_v12 = vmul.f32 %v1737_v14, %v1733_v9 }
0x264c   :  { %1741 = vrot.lane.b32.xlu1 %v1739_v12, %s2648_s22 }
0x26be   :  { %v1742_v18 = vpop.permute.xlu1 %1741 }
0x26bf   :  { %v1744_v13 = vadd.f32 %v1742_v18, %v1734_v63 }
0x26c1   :  { %2627 = vtanh.f32 %v1744_v13 }
0x26cb   :  { %v2628_v17 = vpop.eup %2627 }
0x26cc   :  { %1747 = vrot.lane.b32.xlu0 %v2628_v17, %s2647_s21 }
0x273e   :  { %v1748_v20 = vpop.permute.xlu0 %1747 }
0x273f   :  { %v1750_v19 = vmul.f32 %v1748_v20, %v1733_v9 }
0x2741   :  { %1752 = vrot.lane.b32.xlu1 %v1750_v19, %s2648_s22 }
0x27b3   :  { %v1753_v21 = vpop.permute.xlu1 %1752 }
0x27b4   :  { %2400 = vmatmul.mubr.msk.f32.vlgmr.msra.gmra.mrb[22].mxu0 %vm352_vm5, %v1753_v21 }
0x27b5   :  { %2421 = vmatprep.mubr.msk.f32.mxu0 %vm2643_vm1, %v2644_v15 }
0x2887   :  { %v1822_v27 = vpop.f32.mrb[22].mxu0 }
0x2888   :  { %v1826_v28 = vadd.f32 %v1822_v27, %v334_v23  ;;  %v2401_v29 = vpop.f32.mrb[23].mxu0 }
0x288a   :  { %v1827_v31 = vmul.f32 %v1826_v28, %v2801_v30 }
0x288c   :  { %v1828_v32 = vmul.f32 1.442695, %v1827_v31 }
0x288e   :  { %2629 = vpow2.f32 %v1828_v32 }
0x2898   :  { %v2630_v33 = vpop.eup %2629 }
0x2899   :  { %v1830_v34 = vadd.f32 1.0, %v2630_v33 }
0x289b   :  { %2631 = vrcp.f32 %v1830_v34 }
0x28a5   :  { %v2632_v35 = vpop.eup %2631 }
0x28a6   :  { %v1832_v24 = vmul.f32 %v2632_v35, %v2806_v39 }
0x28a8   :  { %v1833_v56 = vadd.f32 %v1832_v24, %v2811_v41 }
0x28aa   :  { %1836 = vrot.lane.b32.xlu0 %v1833_v56, %s2647_s21  ;;  %v1834_v26 = vmul.f32 %v1833_v56, %v1744_v13 }
0x291c   :  { %v1837_v15 = vpop.permute.xlu0 %1836 }
0x291d   :  { %v1839_v36 = vmul.f32 %v1837_v15, %v1833_v56 }
0x291f   :  { %1841 = vrot.lane.b32.xlu1 %v1839_v36, %s2648_s22 }
0x2991   :  { %v1842_v60 = vpop.permute.xlu1 %1841 }
0x2992   :  { %v1844_v37 = vadd.f32 %v1842_v60, %v1834_v26 }
0x2994   :  { %2633 = vtanh.f32 %v1844_v37 }
0x299e   :  { %v2634_v38 = vpop.eup %2633 }
0x299f   :  { %1847 = vrot.lane.b32.xlu0 %v2634_v38, %s2647_s21 }
0x2a11   :  { %v1848_v40 = vpop.permute.xlu0 %1847 }
0x2a12   :  { %v1850_v42 = vmul.f32 %v1848_v40, %v1833_v56 }
0x2a14   :  { %1852 = vrot.lane.b32.xlu1 %v1850_v42, %s2648_s22 }
0x2a86   :  { %v1853_v43 = vpop.permute.xlu1 %1852 }
0x2a87   :  { %2411 = vmatmul.mubr.msk.f32.vlgmr.msra.gmra.mrb[22].mxu1 %vm352_vm5, %v1853_v43 }
0x2b5a   :  { %v1922_v45 = vpop.f32.mrb[22].mxu1 }
0x2b5b   :  { %v1926_v46 = vadd.f32 %v1922_v45, %v337_v44  ;;  %v2412_v25 = vpop.f32.mrb[23].mxu1 }
0x2b5d   :  { %v1927_v47 = vmul.f32 %v1926_v46, %v2801_v30  ;;  %v1951_v30 = vld [vmem:[%s3120_s4] sm:$0xff] }
0x2b5f   :  { %v1928_v16 = vmul.f32 1.442695, %v1927_v47 }
0x2b61   :  { %2635 = vpow2.f32 %v1928_v16 }
0x2b6b   :  { %v2636_v48 = vpop.eup %2635 }
0x2b6c   :  { %v1930_v49 = vadd.f32 1.0, %v2636_v48 }
0x2b6e   :  { %2637 = vrcp.f32 %v1930_v49 }
0x2b78   :  { %v2638_v50 = vpop.eup %2637 }
0x2b79   :  { %v1932_v51 = vmul.f32 %v2638_v50, %v2806_v39  ;;  %v1952_v39 = vld [vmem:[%s3120_s4 + $0x8] sm:$0xff] }
0x2b7a   :  { %v2521_v55 = vpack.c.bf16 %v1952_v39, %v1951_v30 }
0x2b7b   :  { %v1933_v52 = vadd.f32 %v1932_v51, %v2811_v41  ;;  %v1953_v41 = vld [vmem:[%s3120_s4 + $0x10] sm:$0xff] }
0x2b7c   :  { %2522 = vmatpush3.bf16.msra.mxu0 %v2521_v55  ;;  %v2524_v1 = vpack.c.bf16 %v1954_v0, %v1953_v41 }
0x2b7d   :  { %1936 = vrot.lane.b32.xlu0 %v1933_v52, %s2647_s21  ;;  %v1934_v62 = vmul.f32 %v1933_v52, %v1844_v37  ;;  %2523 = vmatprep.subr.bf16.mxu0 %v2642_v11 }
0x2b80   :  { %2525 = vmatpush3.bf16.msra.mxu0 %v2524_v1 }
0x2bef   :  { %v1937_v61 = vpop.permute.xlu0 %1936 }
0x2bf0   :  { %v1939_v53 = vmul.f32 %v1937_v61, %v1933_v52 }
0x2bf2   :  { %1941 = vrot.lane.b32.xlu1 %v1939_v53, %s2648_s22 }
0x2c64   :  { %v1942_v54 = vpop.permute.xlu1 %1941 }
0x2c65   :  { %v1944_v58 = vadd.f32 %v1942_v54, %v1934_v62 }
0x2c67   :  { %2639 = vtanh.f32 %v1944_v58 }
0x2c71   :  { %v2640_v2 = vpop.eup %2639 }
0x2c72   :  { %1947 = vrot.lane.b32.xlu0 %v2640_v2, %s2647_s21 }
0x2ce4   :  { %v1948_v3 = vpop.permute.xlu0 %1947 }
0x2ce5   :  { %v1950_v4 = vmul.f32 %v1948_v3, %v1933_v52 }
0x2ce7   :  { %1963 = vrot.lane.b32.xlu1 %v1950_v4, %s2648_s22 }
0x2d59   :  { %v1964_v5 = vpop.permute.xlu1 %1963 }
0x2d5a   :  { %2422 = vmatmul.mubr.msk.f32.vlgmr.msra.gmra.mrb[24].mxu0 %vm352_vm5, %v1964_v5 }
0x2e2d   :  { %v2033_v6 = vpop.f32.mrb[24].mxu0 }
0x2e2e   :  { %v2034_v22 = vadd.f32 %v2078_v59, %v2033_v6  ;;  %v2423_v7 = vpop.f32.mrb[25].mxu0 }
0x2e30   :  { %2037 = vst [vmem:[%s3122_s6] sm:$0xff] %v2034_v22 }

</bundles_post_ra>
